<compile_context>
chip_gen: v7x
topology: tpu7x:2x2x1
jax: 0.10.0
libtpu: 0.0.40
codegen_flags: <defaults>
</compile_context>

<pallas_src>
import functools

import jax
import jax.numpy as jnp
import numpy as np
from jax import lax
from jax.experimental import pallas as pl
from jax.experimental.pallas import tpu as pltpu


# ----------------------------------------------------------------------------
# Fused Pallas kernel: chain of  h = act(h @ W_l + b_l)
# ----------------------------------------------------------------------------
def _encoder_kernel(x_ref, *refs):
    """refs = (w0, b0, w1, b1, ..., w5, b5, out_ref).  Layers 0..3 have ReLU."""
    out_ref = refs[-1]
    wb = refs[:-1]
    n_layers = len(wb) // 2

    h = x_ref[...]                                           # [bs, 784] f32
    for li in range(n_layers):                               # statically unrolled
        w_ref = wb[2 * li]
        b_ref = wb[2 * li + 1]
        h = jnp.dot(h, w_ref[...], preferred_element_type=jnp.float32)
        h = h + b_ref[...]                                   # b is [1, N]
        if li < 4:                                           # conv0..conv3 -> ReLU
            h = jnp.maximum(h, 0.0)
    out_ref[...] = h                                         # [bs, 128] lane-dense


# ----------------------------------------------------------------------------
# Parameter prep (host-side, once): fold each Conv2d into an equivalent dense
# GEMM over channels-last flattened features; pad feature dims to 128.
# ----------------------------------------------------------------------------
def _pad_to_128(n):
    return max(128, ((n + 127) // 128) * 128)


def _conv_as_dense(w, b, in_hw, stride, pad, fin_pad, fout_pad):
    """Fold Conv2d (PyTorch OIHW weight, bias) into a dense matmul.

    Activation flatten order (both in and out): feature = (h * W + w) * C + c.
    Returns (W_eq [fin_pad, fout_pad], b_eq [1, fout_pad], (OH, OW)).
    """
    w = np.asarray(w, np.float32)
    b = np.asarray(b, np.float32)
    oc, ic, kh, kw = w.shape
    H, W = in_hw
    OH = (H + 2 * pad - kh) // stride + 1
    OW = (W + 2 * pad - kw) // stride + 1
    weq = np.zeros((fin_pad, fout_pad), np.float32)
    beq = np.zeros((1, fout_pad), np.float32)
    for oh in range(OH):
        for ow in range(OW):
            for o in range(oc):
                fout = (oh * OW + ow) * oc + o
                beq[0, fout] = b[o]
                for i in range(kh):
                    hh = oh * stride + i - pad
                    if hh < 0 or hh >= H:
                        continue
                    for j in range(kw):
                        ww = ow * stride + j - pad
                        if ww < 0 or ww >= W:
                            continue
                        for c in range(ic):
                            weq[(hh * W + ww) * ic + c, fout] = w[o, c, i, j]
    return weq, beq, (OH, OW)


def prepare_params(params, z_dim=8):
    """Returns a flat tuple (W0,B0,...,W5,B5) of device arrays for the kernel."""
    convs = [("conv0", 2, 1), ("conv1", 2, 0), ("conv2", 2, 0), ("conv3", 2, 1)]
    layers = []
    in_hw = (28, 28)
    fin_pad = in_hw[0] * in_hw[1] * 1          # 784 (first-layer input, unpadded)
    for name, stride, padd in convs:
        w, b = params[name]
        oc, _, kh, kw = w.shape
        oh = (in_hw[0] + 2 * padd - kh) // stride + 1
        ow = (in_hw[1] + 2 * padd - kw) // stride + 1
        fout_pad = _pad_to_128(oh * ow * oc)
        weq, beq, _ = _conv_as_dense(w, b, in_hw, stride, padd, fin_pad, fout_pad)
        layers.append((weq, beq))
        in_hw = (oh, ow)
        fin_pad = fout_pad

    # fc0 (no activation)
    wf, bf = params["fc0"]
    wf = np.asarray(wf, np.float32)            # [out=16, in=16]
    bf = np.asarray(bf, np.float32)
    w4 = np.zeros((fin_pad, 128), np.float32)
    w4[: wf.shape[1], : wf.shape[0]] = wf.T
    b4 = np.zeros((1, 128), np.float32)
    b4[0, : wf.shape[0]] = bf
    layers.append((w4, b4))

    # fc_mu | fc_logvar fused into one GEMM (columns [0:z) and [z:2z))
    wm, bm = params["fc_mu"]
    wl, bl = params["fc_logvar"]
    wm = np.asarray(wm, np.float32)
    wl = np.asarray(wl, np.float32)
    w5 = np.zeros((128, 128), np.float32)
    w5[: wm.shape[1], :z_dim] = wm.T
    w5[: wl.shape[1], z_dim:2 * z_dim] = wl.T
    b5 = np.zeros((1, 128), np.float32)
    b5[0, :z_dim] = np.asarray(bm, np.float32)
    b5[0, z_dim:2 * z_dim] = np.asarray(bl, np.float32)
    layers.append((w5, b5))

    flat = []
    for w, b in layers:
        flat.append(jnp.asarray(w))
        flat.append(jnp.asarray(b))
    return tuple(flat)


# ----------------------------------------------------------------------------
# Public forward: one jitted function, one pallas_call.
# ----------------------------------------------------------------------------
@functools.partial(jax.jit, static_argnames=("z_dim",))
def encoder_forward(prep, x, z_dim=8):
    bs = x.shape[0]
    # NCHW -> channels-last flattened features (h*W + w)*C + c
    xf = x.transpose(0, 2, 3, 1).reshape(bs, -1)             # [bs, 784]
    out_width = prep[-1].shape[1]                            # 128 (padded)
    vmem_spec = pl.BlockSpec(memory_space=pltpu.MemorySpace.VMEM)
    out = pl.pallas_call(
        _encoder_kernel,
        out_shape=jax.ShapeDtypeStruct((bs, out_width), jnp.float32),
        in_specs=[vmem_spec] * (1 + len(prep)),
        out_specs=vmem_spec,
    )(xf, *prep)
    return out[:, :z_dim], out[:, z_dim:2 * z_dim]


# ----------------------------------------------------------------------------
# Parameter init (deterministic, PyTorch-default-style uniform bounds)
# ----------------------------------------------------------------------------
def init_params(key, z_dim=8, nef=2):
    def conv_init(k, oc, ic, kh, kw):
        k1, k2 = jax.random.split(k)
        bound = 1.0 / np.sqrt(ic * kh * kw)
        w = jax.random.uniform(k1, (oc, ic, kh, kw), jnp.float32, -bound, bound)
        b = jax.random.uniform(k2, (oc,), jnp.float32, -bound, bound)
        return w, b

    def linear_init(k, out_f, in_f):
        k1, k2 = jax.random.split(k)
        bound = 1.0 / np.sqrt(in_f)
        w = jax.random.uniform(k1, (out_f, in_f), jnp.float32, -bound, bound)
        b = jax.random.uniform(k2, (out_f,), jnp.float32, -bound, bound)
        return w, b

    keys = jax.random.split(key, 7)
    return {
        "conv0": conv_init(keys[0], nef, 1, 4, 4),
        "conv1": conv_init(keys[1], nef * 2, nef, 4, 4),
        "conv2": conv_init(keys[2], nef * 4, nef * 2, 4, 4),
        "conv3": conv_init(keys[3], nef * 8, nef * 4, 4, 4),
        "fc0": linear_init(keys[4], nef * 8, nef * 8 * 1 * 1),
        "fc_mu": linear_init(keys[5], z_dim, nef * 8),
        "fc_logvar": linear_init(keys[6], z_dim, nef * 8),
    }


# ----------------------------------------------------------------------------
# Pure-JAX reference (for correctness check only)
# ----------------------------------------------------------------------------
def ref_forward(params, x):
    def conv(x, w, b, stride, pad):
        y = lax.conv_general_dilated(
            x, w, (stride, stride), [(pad, pad), (pad, pad)],
            dimension_numbers=("NCHW", "OIHW", "NCHW"))
        return y + b[None, :, None, None]

    x = jax.nn.relu(conv(x, *params["conv0"], 2, 1))
    x = jax.nn.relu(conv(x, *params["conv1"], 2, 0))
    x = jax.nn.relu(conv(x, *params["conv2"], 2, 0))
    x = jax.nn.relu(conv(x, *params["conv3"], 2, 1))
    x = x.reshape(x.shape[0], -1)
    w0, b0 = params["fc0"]
    x = x @ w0.T + b0
    wm, bm = params["fc_mu"]
    wl, bl = params["fc_logvar"]
    return x @ wm.T + bm, x @ wl.T + bl


if __name__ == "__main__":
    key = jax.random.PRNGKey(0)
    pkey, xkey = jax.random.split(key)
    z_dim, nef, bs = 8, 2, 2
    params = init_params(pkey, z_dim=z_dim, nef=nef)
    prep = prepare_params(params, z_dim=z_dim)
    x = jax.random.normal(xkey, (bs, 1, 28, 28), jnp.float32)

    mu, logvar = encoder_forward(prep, x, z_dim=z_dim)
    mu = jax.block_until_ready(mu)
    logvar = jax.block_until_ready(logvar)

    rmu, rlogvar = ref_forward(params, x)
    np.testing.assert_allclose(np.asarray(mu), np.asarray(rmu), rtol=1e-4, atol=1e-4)
    np.testing.assert_allclose(np.asarray(logvar), np.asarray(rlogvar), rtol=1e-4, atol=1e-4)
    assert mu.shape == (bs, z_dim) and logvar.shape == (bs, z_dim)

    print("KERNEL_OK")
</pallas_src>

<mosaic_0001>
module attributes {stable_mosaic.version = 11 : i64} {
  func.func @_encoder_kernel(%arg0: memref<2x784xf32, #tpu.memory_space<vmem>>, %arg1: memref<784x512xf32, #tpu.memory_space<vmem>>, %arg2: memref<1x512xf32, #tpu.memory_space<vmem>>, %arg3: memref<512x256xf32, #tpu.memory_space<vmem>>, %arg4: memref<1x256xf32, #tpu.memory_space<vmem>>, %arg5: memref<256x128xf32, #tpu.memory_space<vmem>>, %arg6: memref<1x128xf32, #tpu.memory_space<vmem>>, %arg7: memref<128x128xf32, #tpu.memory_space<vmem>>, %arg8: memref<1x128xf32, #tpu.memory_space<vmem>>, %arg9: memref<128x128xf32, #tpu.memory_space<vmem>>, %arg10: memref<1x128xf32, #tpu.memory_space<vmem>>, %arg11: memref<128x128xf32, #tpu.memory_space<vmem>>, %arg12: memref<1x128xf32, #tpu.memory_space<vmem>>, %arg13: memref<2x128xf32, #tpu.memory_space<vmem>>) attributes {dimension_semantics = [], scalar_prefetch = 0 : i64, scratch_operands = 0 : i64, tpu.core_type = #tpu.core_type<tc>} {
    %c0 = arith.constant 0 : index
    %c0_0 = arith.constant 0 : index
    %0 = vector.load %arg0[%c0, %c0_0] : memref<2x784xf32, #tpu.memory_space<vmem>>, vector<2x784xf32>
    %c0_1 = arith.constant 0 : index
    %c0_2 = arith.constant 0 : index
    %1 = vector.load %arg1[%c0_1, %c0_2] : memref<784x512xf32, #tpu.memory_space<vmem>>, vector<784x512xf32>
    %cst = arith.constant dense<0.000000e+00> : vector<2x512xf32>
    %2 = tpu.matmul %0, %1, %cst {dimension_numbers = #tpu.dot_dimension_numbers<[1], [0], [0], [1], [0, 0, 1, 1], [], []>} : vector<2x784xf32>, vector<784x512xf32>, vector<2x512xf32> -> vector<2x512xf32>
    %c0_3 = arith.constant 0 : index
    %c0_4 = arith.constant 0 : index
    %3 = vector.load %arg2[%c0_3, %c0_4] : memref<1x512xf32, #tpu.memory_space<vmem>>, vector<1x512xf32>
    %4 = vector.broadcast %3 : vector<1x512xf32> to vector<2x512xf32>
    %5 = arith.addf %2, %4 : vector<2x512xf32>
    %cst_5 = arith.constant 0.000000e+00 : f32
    %6 = vector.broadcast %cst_5 : f32 to vector<2x512xf32>
    %7 = arith.maximumf %5, %6 : vector<2x512xf32>
    %c0_6 = arith.constant 0 : index
    %c0_7 = arith.constant 0 : index
    %8 = vector.load %arg3[%c0_6, %c0_7] : memref<512x256xf32, #tpu.memory_space<vmem>>, vector<512x256xf32>
    %cst_8 = arith.constant dense<0.000000e+00> : vector<2x256xf32>
    %9 = tpu.matmul %7, %8, %cst_8 {dimension_numbers = #tpu.dot_dimension_numbers<[1], [0], [0], [1], [0, 0, 1, 1], [], []>} : vector<2x512xf32>, vector<512x256xf32>, vector<2x256xf32> -> vector<2x256xf32>
    %c0_9 = arith.constant 0 : index
    %c0_10 = arith.constant 0 : index
    %10 = vector.load %arg4[%c0_9, %c0_10] : memref<1x256xf32, #tpu.memory_space<vmem>>, vector<1x256xf32>
    %11 = vector.broadcast %10 : vector<1x256xf32> to vector<2x256xf32>
    %12 = arith.addf %9, %11 : vector<2x256xf32>
    %cst_11 = arith.constant 0.000000e+00 : f32
    %13 = vector.broadcast %cst_11 : f32 to vector<2x256xf32>
    %14 = arith.maximumf %12, %13 : vector<2x256xf32>
    %c0_12 = arith.constant 0 : index
    %c0_13 = arith.constant 0 : index
    %15 = vector.load %arg5[%c0_12, %c0_13] : memref<256x128xf32, #tpu.memory_space<vmem>>, vector<256x128xf32>
    %cst_14 = arith.constant dense<0.000000e+00> : vector<2x128xf32>
    %16 = tpu.matmul %14, %15, %cst_14 {dimension_numbers = #tpu.dot_dimension_numbers<[1], [0], [0], [1], [0, 0, 1, 1], [], []>} : vector<2x256xf32>, vector<256x128xf32>, vector<2x128xf32> -> vector<2x128xf32>
    %c0_15 = arith.constant 0 : index
    %c0_16 = arith.constant 0 : index
    %17 = vector.load %arg6[%c0_15, %c0_16] : memref<1x128xf32, #tpu.memory_space<vmem>>, vector<1x128xf32>
    %18 = vector.broadcast %17 : vector<1x128xf32> to vector<2x128xf32>
    %19 = arith.addf %16, %18 : vector<2x128xf32>
    %cst_17 = arith.constant 0.000000e+00 : f32
    %20 = vector.broadcast %cst_17 : f32 to vector<2x128xf32>
    %21 = arith.maximumf %19, %20 : vector<2x128xf32>
    %c0_18 = arith.constant 0 : index
    %c0_19 = arith.constant 0 : index
    %22 = vector.load %arg7[%c0_18, %c0_19] : memref<128x128xf32, #tpu.memory_space<vmem>>, vector<128x128xf32>
    %cst_20 = arith.constant dense<0.000000e+00> : vector<2x128xf32>
    %23 = tpu.matmul %21, %22, %cst_20 {dimension_numbers = #tpu.dot_dimension_numbers<[1], [0], [0], [1], [0, 0, 1, 1], [], []>} : vector<2x128xf32>, vector<128x128xf32>, vector<2x128xf32> -> vector<2x128xf32>
    %c0_21 = arith.constant 0 : index
    %c0_22 = arith.constant 0 : index
    %24 = vector.load %arg8[%c0_21, %c0_22] : memref<1x128xf32, #tpu.memory_space<vmem>>, vector<1x128xf32>
    %25 = vector.broadcast %24 : vector<1x128xf32> to vector<2x128xf32>
    %26 = arith.addf %23, %25 : vector<2x128xf32>
    %cst_23 = arith.constant 0.000000e+00 : f32
    %27 = vector.broadcast %cst_23 : f32 to vector<2x128xf32>
    %28 = arith.maximumf %26, %27 : vector<2x128xf32>
    %c0_24 = arith.constant 0 : index
    %c0_25 = arith.constant 0 : index
    %29 = vector.load %arg9[%c0_24, %c0_25] : memref<128x128xf32, #tpu.memory_space<vmem>>, vector<128x128xf32>
    %cst_26 = arith.constant dense<0.000000e+00> : vector<2x128xf32>
    %30 = tpu.matmul %28, %29, %cst_26 {dimension_numbers = #tpu.dot_dimension_numbers<[1], [0], [0], [1], [0, 0, 1, 1], [], []>} : vector<2x128xf32>, vector<128x128xf32>, vector<2x128xf32> -> vector<2x128xf32>
    %c0_27 = arith.constant 0 : index
    %c0_28 = arith.constant 0 : index
    %31 = vector.load %arg10[%c0_27, %c0_28] : memref<1x128xf32, #tpu.memory_space<vmem>>, vector<1x128xf32>
    %32 = vector.broadcast %31 : vector<1x128xf32> to vector<2x128xf32>
    %33 = arith.addf %30, %32 : vector<2x128xf32>
    %c0_29 = arith.constant 0 : index
    %c0_30 = arith.constant 0 : index
    %34 = vector.load %arg11[%c0_29, %c0_30] : memref<128x128xf32, #tpu.memory_space<vmem>>, vector<128x128xf32>
    %cst_31 = arith.constant dense<0.000000e+00> : vector<2x128xf32>
    %35 = tpu.matmul %33, %34, %cst_31 {dimension_numbers = #tpu.dot_dimension_numbers<[1], [0], [0], [1], [0, 0, 1, 1], [], []>} : vector<2x128xf32>, vector<128x128xf32>, vector<2x128xf32> -> vector<2x128xf32>
    %c0_32 = arith.constant 0 : index
    %c0_33 = arith.constant 0 : index
    %36 = vector.load %arg12[%c0_32, %c0_33] : memref<1x128xf32, #tpu.memory_space<vmem>>, vector<1x128xf32>
    %37 = vector.broadcast %36 : vector<1x128xf32> to vector<2x128xf32>
    %38 = arith.addf %35, %37 : vector<2x128xf32>
    %c0_34 = arith.constant 0 : index
    %c0_35 = arith.constant 0 : index
    %39 = vector.load %arg13[%c0_34, %c0_35] : memref<2x128xf32, #tpu.memory_space<vmem>>, vector<2x128xf32>
    tpu.vector_store %arg13[%c0_34, %c0_35], %38 {strides = array<i32>} : memref<2x128xf32, #tpu.memory_space<vmem>>, vector<2x128xf32>,
    return
  }
}

</mosaic_0001>

<bundles_post_ra>
// kernel: encoder_forward.1
= control target key start
LH: loop header
LB: loop body
LE: loop exit
PB: predicated region body
PF: predicated region fallthrough
CT: control target
= control target key end

     0   :  { %18 = vsyncpa [#allocation3], 0  ;;  %s3417_s0 = inlined_call_operand.vmem [shape: f32[2,784], index: 0, kind: input, shape index: {}]   ;;  %s3418_s1 = inlined_call_operand.hbm [shape: f32[784,512], index: 1, kind: input, shape index: {}]   ;;  %s3419_s2 = inlined_call_operand.hbm [shape: f32[1,512], index: 2, kind: input, shape index: {}]   ;;  %s3420_s3 = inlined_call_operand.hbm [shape: f32[512,256], index: 3, kind: input, shape index: {}]   ;;  %s3421_s4 = inlined_call_operand.hbm [shape: f32[1,256], index: 4, kind: input, shape index: {}]   ;;  %s3422_s5 = inlined_call_operand.hbm [shape: f32[256,128], index: 5, kind: input, shape index: {}]   ;;  %s3423_s6 = inlined_call_operand.hbm [shape: f32[1,128], index: 6, kind: input, shape index: {}]   ;;  %s3424_s7 = inlined_call_operand.hbm [shape: f32[128,128], index: 7, kind: input, shape index: {}]   ;;  %s3425_s8 = inlined_call_operand.hbm [shape: f32[1,128], index: 8, kind: input, shape index: {}]   ;;  %s3426_s9 = inlined_call_operand.hbm [shape: f32[128,128], index: 9, kind: input, shape index: {}]   ;;  %s3427_s10 = inlined_call_operand.hbm [shape: f32[1,128], index: 10, kind: input, shape index: {}]   ;;  %s3428_s11 = inlined_call_operand.hbm [shape: f32[128,128], index: 11, kind: input, shape index: {}]   ;;  %s3429_s12 = inlined_call_operand.hbm [shape: f32[1,128], index: 12, kind: input, shape index: {}]   ;;  %s3430_s13 = inlined_call_operand.vmem [shape: f32[2,128], index: 13, kind: output, shape index: {}]  }
   0x1   :  { %19 = vsyncpa [#allocation5], 0 }
   0x2   :  { %20 = vsyncpa [#allocation8], 0 }
   0x3   :  { %21 = vsyncpa [#allocation11], 0 }
   0x4   :  { %22 = vsyncpa [#allocation14], 0 }
   0x5   :  { %23 = vsyncpa [#allocation17], 0 }
   0x6   :  { %24 = vsyncpa [#allocation20], 0  ;;  %s3056_s25 = smov [#allocation4]   ;;  %s3057_s27 = smov [#allocation7]  }
   0x7   :  { %s45_s26 = sshll.u32 %s3056_s25, 4  ;;  %s67_s28 = sshll.u32 %s3057_s27, 4  ;;  %s46_s26 = int_to_ptr.vmem [resolvable:$true] %s45_s26  ;;  %s68_s28 = int_to_ptr.vmem [resolvable:$true] %s67_s28 }
   0x8   :  { %s2778_s14 = scalar_lea.hbm %s3419_s2, 64 }
   0x9   :  { %p2779_p0 = scmp.ne.s32.totalorder %s3419_s2, %s2778_s14  ;;  %p2782_p1 = scmp.lt.u32.totalorder %s2778_s14, %s3419_s2 }
   0xb   :  { %p2784_p2 = pnand %p2782_p1, %p2779_p0 }
   0xd   :  { %2787 = shalt.err (!%p2784_p2)
}
   0xe   :  { %s2788_s19 = scalar_lea.vmem %s46_s26, 64  ;;  %p2793_p4 = scmp.lt.s32.totalorder %s46_s26, %s46_s26 }
   0xf   :  { %p2789_p3 = scmp.ne.s32.totalorder %s46_s26, %s2788_s19  ;;  %p2794_p5 = scmp.lt.s32.totalorder %s2788_s19, %s2788_s19 }
  0x11   :  { %p2795_p6 = por %p2794_p5, %p2793_p4 }
  0x13   :  { %p2796_p7 = pnand %p2795_p6, %p2789_p3 }
  0x15   :  { %2799 = shalt.err (!%p2796_p7)
}
  0x16   :  { %48 = dma.hbm_to_vmem [thread:$0]  %s3419_s2, 64, %s46_s26, [#allocation5]  }
  0x17   :  { %s2800_s24 = scalar_lea.hbm %s3421_s4, 32 }
  0x18   :  { %p2801_p8 = scmp.ne.s32.totalorder %s3421_s4, %s2800_s24  ;;  %p2804_p9 = scmp.lt.u32.totalorder %s2800_s24, %s3421_s4 }
  0x1a   :  { %p2806_p10 = pnand %p2804_p9, %p2801_p8 }
  0x1c   :  { %2809 = shalt.err (!%p2806_p10)
}
  0x1d   :  { %s2810_s14 = scalar_lea.vmem %s68_s28, 32  ;;  %p2815_p12 = scmp.lt.s32.totalorder %s68_s28, %s68_s28 }
  0x1e   :  { %p2811_p11 = scmp.ne.s32.totalorder %s68_s28, %s2810_s14  ;;  %p2816_p13 = scmp.lt.s32.totalorder %s2810_s14, %s2810_s14 }
  0x20   :  { %p2817_p0 = por %p2816_p13, %p2815_p12 }
  0x22   :  { %p2818_p1 = pnand %p2817_p0, %p2811_p11 }
  0x24   :  { %2821 = shalt.err (!%p2818_p1)
}
  0x25   :  { %70 = dma.hbm_to_vmem [thread:$0]  %s3421_s4, 32, %s68_s28, [#allocation8]  }
  0x26   :  { %s3058_s15 = smov [#allocation10]   ;;  %s3059_s17 = smov [#allocation13]  }
  0x27   :  { %s89_s16 = sshll.u32 %s3058_s15, 4  ;;  %s111_s18 = sshll.u32 %s3059_s17, 4  ;;  %s90_s16 = int_to_ptr.vmem [resolvable:$true] %s89_s16  ;;  %s112_s18 = int_to_ptr.vmem [resolvable:$true] %s111_s18 }
  0x28   :  { %s2822_s21 = scalar_lea.hbm %s3423_s6, 16 }
  0x29   :  { %p2823_p2 = scmp.ne.s32.totalorder %s3423_s6, %s2822_s21  ;;  %p2826_p3 = scmp.lt.u32.totalorder %s2822_s21, %s3423_s6 }
  0x2b   :  { %p2828_p4 = pnand %p2826_p3, %p2823_p2 }
  0x2d   :  { %2831 = shalt.err (!%p2828_p4)
}
  0x2e   :  { %s2832_s4 = scalar_lea.vmem %s90_s16, 16  ;;  %s2836_s28 = scalar_lea.vmem %s90_s16, 32 }
  0x2f   :  { %p2833_p5 = scmp.ne.s32.totalorder %s90_s16, %s2832_s4  ;;  %p2837_p6 = scmp.lt.s32.totalorder %s90_s16, %s90_s16 }
  0x30   :  { %p2838_p7 = scmp.lt.s32.totalorder %s2836_s28, %s2832_s4 }
  0x32   :  { %p2839_p8 = por %p2838_p7, %p2837_p6 }
  0x34   :  { %p2840_p9 = pnand %p2839_p8, %p2833_p5 }
  0x36   :  { %2843 = shalt.err (!%p2840_p9)
}
  0x37   :  { %92 = dma.hbm_to_vmem [thread:$0]  %s3423_s6, 16, %s90_s16, [#allocation11]  }
  0x38   :  { %s2844_s2 = scalar_lea.hbm %s3425_s8, 16 }
  0x39   :  { %p2845_p10 = scmp.ne.s32.totalorder %s3425_s8, %s2844_s2  ;;  %p2848_p11 = scmp.lt.u32.totalorder %s2844_s2, %s3425_s8 }
  0x3b   :  { %p2850_p12 = pnand %p2848_p11, %p2845_p10 }
  0x3d   :  { %2853 = shalt.err (!%p2850_p12)
}
  0x3e   :  { %s2854_s20 = scalar_lea.vmem %s112_s18, 16  ;;  %s2858_s21 = scalar_lea.vmem %s112_s18, 32 }
  0x3f   :  { %p2855_p13 = scmp.ne.s32.totalorder %s112_s18, %s2854_s20  ;;  %p2859_p0 = scmp.lt.s32.totalorder %s112_s18, %s112_s18 }
  0x40   :  { %p2860_p1 = scmp.lt.s32.totalorder %s2858_s21, %s2854_s20 }
  0x42   :  { %p2861_p2 = por %p2860_p1, %p2859_p0 }
  0x44   :  { %p2862_p3 = pnand %p2861_p2, %p2855_p13 }
  0x46   :  { %2865 = shalt.err (!%p2862_p3)
}
  0x47   :  { %114 = dma.hbm_to_vmem [thread:$0]  %s3425_s8, 16, %s112_s18, [#allocation14]  }
  0x48   :  { %s3060_s22 = smov [#allocation16]   ;;  %s3061_s24 = smov [#allocation2]  }
  0x49   :  { %s133_s23 = sshll.u32 %s3060_s22, 4  ;;  %s32_s25 = sshll.u32 %s3061_s24, 4  ;;  %s134_s23 = int_to_ptr.vmem [resolvable:$true] %s133_s23  ;;  %s3196_s25 = int_to_ptr.vmem [resolvable:$true] %s32_s25 }
  0x4a   :  { %s2866_s27 = scalar_lea.hbm %s3427_s10, 16 }
  0x4b   :  { %p2867_p4 = scmp.ne.s32.totalorder %s3427_s10, %s2866_s27  ;;  %p2870_p5 = scmp.lt.u32.totalorder %s2866_s27, %s3427_s10 }
  0x4d   :  { %p2872_p6 = pnand %p2870_p5, %p2867_p4 }
  0x4f   :  { %2875 = shalt.err (!%p2872_p6)
}
  0x50   :  { %s2876_s8 = scalar_lea.vmem %s134_s23, 16  ;;  %s2880_s18 = scalar_lea.vmem %s134_s23, 32 }
  0x51   :  { %p2877_p7 = scmp.ne.s32.totalorder %s134_s23, %s2876_s8  ;;  %p2881_p8 = scmp.lt.s32.totalorder %s134_s23, %s134_s23 }
  0x52   :  { %p2882_p9 = scmp.lt.s32.totalorder %s2880_s18, %s2876_s8 }
  0x54   :  { %p2883_p10 = por %p2882_p9, %p2881_p8 }
  0x56   :  { %p2884_p11 = pnand %p2883_p10, %p2877_p7 }
  0x58   :  { %2887 = shalt.err (!%p2884_p11)
}
  0x59   :  { %136 = dma.hbm_to_vmem [thread:$0]  %s3427_s10, 16, %s134_s23, [#allocation17]  }
  0x5a   :  { %s2888_s20 = scalar_lea.hbm %s3418_s1, 50176 }
  0x5b   :  { %p2889_p12 = scmp.ne.s32.totalorder %s3418_s1, %s2888_s20  ;;  %p2892_p13 = scmp.lt.u32.totalorder %s2888_s20, %s3418_s1 }
  0x5d   :  { %p2894_p0 = pnand %p2892_p13, %p2889_p12 }
  0x5f   :  { %2897 = shalt.err (!%p2894_p0)
}
  0x60   :  { %s2898_s24 = scalar_lea.vmem %s3196_s25, 50176  ;;  %p2903_p2 = scmp.lt.s32.totalorder %s3196_s25, %s3196_s25 }
  0x61   :  { %p2899_p1 = scmp.ne.s32.totalorder %s3196_s25, %s2898_s24  ;;  %p2904_p3 = scmp.lt.s32.totalorder %s2898_s24, %s2898_s24 }
  0x63   :  { %p2905_p4 = por %p2904_p3, %p2903_p2 }
  0x65   :  { %p2906_p5 = pnand %p2905_p4, %p2899_p1 }
  0x67   :  { %2909 = shalt.err (!%p2906_p5)
}
  0x68   :  { %s3062_s10 = smov 512   ;;  %s3063_s23 = smov 32  }
  0x69   :  { %38 = dma.hbm_to_vmem [thread:$0]  %s3418_s1, 50176, %s3196_s25, [#allocation3], %s3062_s10, %s3062_s10, %s3063_s23  }
  0x6a   :  { %s3064_s27 = smov [#allocation6]   ;;  %s2910_s2 = scalar_lea.hbm %s3420_s3, 16384 }
  0x6b   :  { %s54_s29 = sshll.u32 %s3064_s27, 4  ;;  %p2911_p6 = scmp.ne.s32.totalorder %s3420_s3, %s2910_s2  ;;  %s55_s29 = int_to_ptr.vmem [resolvable:$true] %s54_s29 }
  0x6c   :  { %p2914_p7 = scmp.lt.u32.totalorder %s2910_s2, %s3420_s3 }
  0x6e   :  { %p2916_p8 = pnand %p2914_p7, %p2911_p6 }
  0x70   :  { %2919 = shalt.err (!%p2916_p8)
}
  0x71   :  { %s2920_s17 = scalar_lea.vmem %s55_s29, 16384  ;;  %p2925_p10 = scmp.lt.s32.totalorder %s55_s29, %s55_s29 }
  0x72   :  { %p2921_p9 = scmp.ne.s32.totalorder %s55_s29, %s2920_s17  ;;  %p2926_p11 = scmp.lt.s32.totalorder %s2920_s17, %s2920_s17 }
  0x74   :  { %p2927_p12 = por %p2926_p11, %p2925_p10 }
  0x76   :  { %p2928_p13 = pnand %p2927_p12, %p2921_p9 }
  0x78   :  { %2931 = shalt.err (!%p2928_p13)
}
  0x79   :  { %s3065_s1 = smov 256   ;;  %s3066_s25 = smov 16  }
  0x7a   :  { %60 = dma.hbm_to_vmem [thread:$0]  %s3420_s3, 16384, %s55_s29, [#allocation5], %s3065_s1, %s3065_s1, %s3066_s25  }
  0x7b   :  { %s3067_s21 = smov [#allocation9]   ;;  %s2932_s24 = scalar_lea.hbm %s3422_s5, 4096 }
  0x7c   :  { %s76_s6 = sshll.u32 %s3067_s21, 4  ;;  %p2933_p0 = scmp.ne.s32.totalorder %s3422_s5, %s2932_s24  ;;  %s77_s6 = int_to_ptr.vmem [resolvable:$true] %s76_s6 }
  0x7d   :  { %p2936_p1 = scmp.lt.u32.totalorder %s2932_s24, %s3422_s5 }
  0x7f   :  { %p2938_p2 = pnand %p2936_p1, %p2933_p0 }
  0x81   :  { %2941 = shalt.err (!%p2938_p2)
}
  0x82   :  { %s2942_s27 = scalar_lea.vmem %s77_s6, 4096  ;;  %p2947_p4 = scmp.lt.s32.totalorder %s77_s6, %s77_s6 }
  0x83   :  { %p2943_p3 = scmp.ne.s32.totalorder %s77_s6, %s2942_s27  ;;  %p2948_p5 = scmp.lt.s32.totalorder %s2942_s27, %s2942_s27 }
  0x85   :  { %p2949_p6 = por %p2948_p5, %p2947_p4 }
  0x87   :  { %p2950_p7 = pnand %p2949_p6, %p2943_p3 }
  0x89   :  { %2953 = shalt.err (!%p2950_p7)
}
  0x8a   :  { %s3068_s3 = smov 128   ;;  %s3069_s29 = smov 8  }
  0x8b   :  { %82 = dma.hbm_to_vmem [thread:$0]  %s3422_s5, 4096, %s77_s6, [#allocation8], %s3068_s3, %s3068_s3, %s3069_s29  }
  0x8c   :  { %s3070_s2 = smov [#allocation12]   ;;  %s3071_s18 = smov [#allocation15]  }
  0x8d   :  { %s98_s8 = sshll.u32 %s3070_s2, 4  ;;  %s120_s26 = sshll.u32 %s3071_s18, 4  ;;  %s99_s8 = int_to_ptr.vmem [resolvable:$true] %s98_s8  ;;  %s3254_s26 = int_to_ptr.vmem [resolvable:$true] %s120_s26 }
  0x8e   :  { %s2954_s1 = scalar_lea.hbm %s3424_s7, 2048 }
  0x8f   :  { %p2955_p8 = scmp.ne.s32.totalorder %s3424_s7, %s2954_s1  ;;  %p2958_p9 = scmp.lt.u32.totalorder %s2954_s1, %s3424_s7 }
  0x91   :  { %p2960_p10 = pnand %p2958_p9, %p2955_p8 }
  0x93   :  { %2963 = shalt.err (!%p2960_p10)
}
  0x94   :  { %s2964_s5 = scalar_lea.vmem %s99_s8, 2048  ;;  %p2969_p12 = scmp.lt.s32.totalorder %s99_s8, %s99_s8 }
  0x95   :  { %p2965_p11 = scmp.ne.s32.totalorder %s99_s8, %s2964_s5  ;;  %p2970_p13 = scmp.lt.s32.totalorder %s2964_s5, %s2964_s5 }
  0x97   :  { %p2971_p0 = por %p2970_p13, %p2969_p12 }
  0x99   :  { %p2972_p1 = pnand %p2971_p0, %p2965_p11 }
  0x9b   :  { %2975 = shalt.err (!%p2972_p1)
}
  0x9c   :  { %104 = dma.hbm_to_vmem [thread:$0]  %s3424_s7, 2048, %s99_s8, [#allocation11], %s3068_s3, %s3068_s3, %s3069_s29  }
  0x9d   :  { %s2976_s10 = scalar_lea.hbm %s3426_s9, 2048 }
  0x9e   :  { %p2977_p2 = scmp.ne.s32.totalorder %s3426_s9, %s2976_s10  ;;  %p2980_p3 = scmp.lt.u32.totalorder %s2976_s10, %s3426_s9 }
  0xa0   :  { %p2982_p4 = pnand %p2980_p3, %p2977_p2 }
  0xa2   :  { %2985 = shalt.err (!%p2982_p4)
}
  0xa3   :  { %s2986_s30 = scalar_lea.vmem %s3254_s26, 2048  ;;  %p2991_p6 = scmp.lt.s32.totalorder %s3254_s26, %s3254_s26 }
  0xa4   :  { %p2987_p5 = scmp.ne.s32.totalorder %s3254_s26, %s2986_s30  ;;  %p2992_p7 = scmp.lt.s32.totalorder %s2986_s30, %s2986_s30 }
  0xa6   :  { %p2993_p8 = por %p2992_p7, %p2991_p6 }
  0xa8   :  { %p2994_p9 = pnand %p2993_p8, %p2987_p5 }
  0xaa   :  { %2997 = shalt.err (!%p2994_p9)
}
  0xab   :  { %126 = dma.hbm_to_vmem [thread:$0]  %s3426_s9, 2048, %s3254_s26, [#allocation14], %s3068_s3, %s3068_s3, %s3069_s29  }
  0xac   :  { %s3072_s2 = smov [#allocation18]   ;;  %s3073_s18 = smov [#allocation19]  }
  0xad   :  { %s142_s8 = sshll.u32 %s3072_s2, 4  ;;  %s155_s15 = sshll.u32 %s3073_s18, 4  ;;  %s143_s8 = int_to_ptr.vmem [resolvable:$true] %s142_s8  ;;  %s156_s15 = int_to_ptr.vmem [resolvable:$true] %s155_s15 }
  0xae   :  { %s2998_s25 = scalar_lea.hbm %s3428_s11, 2048 }
  0xaf   :  { %p2999_p10 = scmp.ne.s32.totalorder %s3428_s11, %s2998_s25  ;;  %p3002_p11 = scmp.lt.u32.totalorder %s2998_s25, %s3428_s11 }
  0xb1   :  { %p3004_p12 = pnand %p3002_p11, %p2999_p10 }
  0xb3   :  { %3007 = shalt.err (!%p3004_p12)
}
  0xb4   :  { %s3008_s9 = scalar_lea.vmem %s143_s8, 2048  ;;  %p3013_p0 = scmp.lt.s32.totalorder %s143_s8, %s143_s8 }
  0xb5   :  { %p3009_p13 = scmp.ne.s32.totalorder %s143_s8, %s3008_s9  ;;  %p3014_p1 = scmp.lt.s32.totalorder %s3008_s9, %s3008_s9 }
  0xb7   :  { %p3015_p2 = por %p3014_p1, %p3013_p0 }
  0xb9   :  { %p3016_p3 = pnand %p3015_p2, %p3009_p13 }
  0xbb   :  { %3019 = shalt.err (!%p3016_p3)
}
  0xbc   :  { %148 = dma.hbm_to_vmem [thread:$0]  %s3428_s11, 2048, %s143_s8, [#allocation17], %s3068_s3, %s3068_s3, %s3069_s29  }
  0xbd   :  { %s3020_s24 = scalar_lea.hbm %s3429_s12, 16 }
  0xbe   :  { %p3021_p4 = scmp.ne.s32.totalorder %s3429_s12, %s3020_s24  ;;  %p3024_p5 = scmp.lt.u32.totalorder %s3020_s24, %s3429_s12 }
  0xc0   :  { %p3026_p6 = pnand %p3024_p5, %p3021_p4 }
  0xc2   :  { %3029 = shalt.err (!%p3026_p6)
}
  0xc3   :  { %s3030_s27 = scalar_lea.vmem %s156_s15, 16  ;;  %s3034_s30 = scalar_lea.vmem %s156_s15, 32 }
  0xc4   :  { %p3031_p7 = scmp.ne.s32.totalorder %s156_s15, %s3030_s27  ;;  %p3035_p8 = scmp.lt.s32.totalorder %s156_s15, %s156_s15 }
  0xc5   :  { %p3036_p9 = scmp.lt.s32.totalorder %s3034_s30, %s3030_s27 }
  0xc7   :  { %p3037_p10 = por %p3036_p9, %p3035_p8 }
  0xc9   :  { %p3038_p11 = pnand %p3037_p10, %p3031_p7 }
  0xcb   :  { %3041 = shalt.err (!%p3038_p11)
}
  0xcc   :  { %158 = dma.hbm_to_vmem [thread:$0]  %s3429_s12, 16, %s156_s15, [#allocation20]  }
  0xcd   :  { %3042 = dma.done.wait [#allocation3], 50176  }
  0xce   :  { %3043 = vsyncadd [#allocation3], 4294917120 }
  0xcf   :  { %3044 = dma.done.wait [#allocation5], 16448  }
  0xd0   :  { %3045 = vsyncadd [#allocation5], 4294950848 }
  0xd1   :  { %3046 = dma.done.wait [#allocation8], 4128  }
  0xd2   :  { %3047 = vsyncadd [#allocation8], 4294963168 }
  0xd3   :  { %3048 = dma.done.wait [#allocation11], 2064  }
  0xd4   :  { %3049 = vsyncadd [#allocation11], 4294965232 }
  0xd5   :  { %3050 = dma.done.wait [#allocation14], 2064  }
  0xd6   :  { %3051 = vsyncadd [#allocation14], 4294965232 }
  0xd7   :  { %3052 = dma.done.wait [#allocation17], 2064  }
  0xd8   :  { %3053 = vsyncadd [#allocation17], 4294965232 }
  0xd9   :  { %3054 = dma.done.wait [#allocation20], 16  }
  0xda   :  { %3055 = vsyncadd [#allocation20], 4294967280  ;;  %v198_v0 = vld [vmem:[#allocation2 + $0x8] sm:$0xff]  ;;  %v200_v2 = vld [vmem:[#allocation2 + $0x18] sm:$0xff]  ;;  %vm652_vm0 = vcmask 130048   ;;  %vm3077_vm1 = vmmov 0  }
  0xdb   :  { %v202_v1 = vld [vmem:[#allocation2 + $0x28] sm:$0xff]  ;;  %v204_v4 = vld [vmem:[#allocation2 + $0x38] sm:$0xff]  ;;  %v197_v5 = vld [vmem:[#allocation2] sm:$0xff] }
  0xdc   :  { %v2110_v3 = vpack.c.bf16 %v202_v1, %v198_v0  ;;  %v201_v6 = vld [vmem:[#allocation2 + $0x20] sm:$0xff]  ;;  %v2306_v7 = vpack.c.bf16 %v204_v4, %v200_v2  ;;  %v199_v9 = vld [vmem:[#allocation2 + $0x10] sm:$0xff]  ;;  %v206_v11 = vld [vmem:[#allocation2 + $0x48] sm:$0xff] }
  0xdd   :  { %v2112_v8 = vpack.c.bf16 %v201_v6, %v197_v5  ;;  %v203_v10 = vld [vmem:[#allocation2 + $0x30] sm:$0xff]  ;;  %v210_v13 = vld [vmem:[#allocation2 + $0x68] sm:$0xff]  ;;  %v208_v14 = vld [vmem:[#allocation2 + $0x58] sm:$0xff] }
  0xde   :  { %2111 = vmatprep.subr.bf16.mxu0 %v2110_v3  ;;  %v2308_v12 = vpack.c.bf16 %v203_v10, %v199_v9  ;;  %v212_v15 = vld [vmem:[#allocation2 + $0x78] sm:$0xff]  ;;  %2307 = vmatprep.subr.bf16.mxu1 %v2306_v7  ;;  %v2114_v16 = vpack.c.bf16 %v210_v13, %v206_v11  ;;  %v205_v18 = vld [vmem:[#allocation2 + $0x40] sm:$0xff]  ;;  %v207_v20 = vld [vmem:[#allocation2 + $0x50] sm:$0xff] }
  0xdf   :  { %2113 = vmatpush1.bf16.msra.mxu0 %v2112_v8  ;;  %v2310_v17 = vpack.c.bf16 %v212_v15, %v208_v14  ;;  %v209_v19 = vld [vmem:[#allocation2 + $0x60] sm:$0xff]  ;;  %v211_v22 = vld [vmem:[#allocation2 + $0x70] sm:$0xff]  ;;  %v214_v23 = vld [vmem:[#allocation2 + $0x88] sm:$0xff] }
  0xe0   :  { %2309 = vmatpush1.bf16.msra.mxu1 %v2308_v12  ;;  %v2116_v21 = vpack.c.bf16 %v209_v19, %v205_v18  ;;  %v218_v24 = vld [vmem:[#allocation2 + $0xa8] sm:$0xff]  ;;  %2115 = vmatprep.subr.bf16.mxu0 %v2114_v16  ;;  %v2312_v25 = vpack.c.bf16 %v211_v22, %v207_v20  ;;  %v216_v27 = vld [vmem:[#allocation2 + $0x98] sm:$0xff]  ;;  %v213_v29 = vld [vmem:[#allocation2 + $0x80] sm:$0xff] }
  0xe1   :  { %2311 = vmatprep.subr.bf16.mxu1 %v2310_v17  ;;  %v2118_v26 = vpack.c.bf16 %v218_v24, %v214_v23  ;;  %v220_v28 = vld [vmem:[#allocation2 + $0xb8] sm:$0xff]  ;;  %v217_v31 = vld [vmem:[#allocation2 + $0xa0] sm:$0xff]  ;;  %v215_v32 = vld [vmem:[#allocation2 + $0x90] sm:$0xff] }
  0xe2   :  { %v2314_v30 = vpack.c.bf16 %v220_v28, %v216_v27  ;;  %v219_v33 = vld [vmem:[#allocation2 + $0xb0] sm:$0xff]  ;;  %v2120_v34 = vpack.c.bf16 %v217_v31, %v213_v29  ;;  %v222_v35 = vld [vmem:[#allocation2 + $0xc8] sm:$0xff]  ;;  %v224_v37 = vld [vmem:[#allocation2 + $0xd8] sm:$0xff] }
  0xe3   :  { %2117 = vmatpush1.bf16.msra.mxu0 %v2116_v21  ;;  %v226_v36 = vld [vmem:[#allocation2 + $0xe8] sm:$0xff]  ;;  %v2316_v38 = vpack.c.bf16 %v219_v33, %v215_v32  ;;  %v228_v40 = vld [vmem:[#allocation2 + $0xf8] sm:$0xff]  ;;  %v221_v41 = vld [vmem:[#allocation2 + $0xc0] sm:$0xff] }
  0xe4   :  { %2313 = vmatpush1.bf16.msra.mxu1 %v2312_v25  ;;  %2119 = vmatprep.subr.bf16.mxu0 %v2118_v26  ;;  %v2122_v39 = vpack.c.bf16 %v226_v36, %v222_v35  ;;  %v225_v42 = vld [vmem:[#allocation2 + $0xe0] sm:$0xff]  ;;  %v2318_v43 = vpack.c.bf16 %v228_v40, %v224_v37  ;;  %v223_v44 = vld [vmem:[#allocation2 + $0xd0] sm:$0xff]  ;;  %v230_v46 = vld [vmem:[#allocation2 + $0x108] sm:$0xff] }
  0xe5   :  { %2315 = vmatprep.subr.bf16.mxu1 %v2314_v30  ;;  %v227_v45 = vld [vmem:[#allocation2 + $0xf0] sm:$0xff]  ;;  %v234_v47 = vld [vmem:[#allocation2 + $0x128] sm:$0xff]  ;;  %v232_v48 = vld [vmem:[#allocation2 + $0x118] sm:$0xff]  ;;  %v2124_v50 = vpack.c.bf16 %v225_v42, %v221_v41 }
  0xe6   :  { %v236_v49 = vld [vmem:[#allocation2 + $0x138] sm:$0xff]  ;;  %v2320_v51 = vpack.c.bf16 %v227_v45, %v223_v44  ;;  %v2126_v52 = vpack.c.bf16 %v234_v47, %v230_v46  ;;  %v229_v53 = vld [vmem:[#allocation2 + $0x100] sm:$0xff]  ;;  %v231_v55 = vld [vmem:[#allocation2 + $0x110] sm:$0xff]  ;;  %v591_v46 = vlaneseq  ;;  %v3074_v47 = vmov 1983009808  }
  0xe7   :  { %2121 = vmatpush1.bf16.msra.mxu0 %v2120_v34  ;;  %v233_v54 = vld [vmem:[#allocation2 + $0x120] sm:$0xff]  ;;  %v2322_v56 = vpack.c.bf16 %v236_v49, %v232_v48  ;;  %v235_v57 = vld [vmem:[#allocation2 + $0x130] sm:$0xff]  ;;  %v238_v58 = vld [vmem:[#allocation2 + $0x148] sm:$0xff]  ;;  %v615_v48 = vunpack.c.l.s4 %v3074_v47 }
  0xe8   :  { %2317 = vmatpush1.bf16.msra.mxu1 %v2316_v38  ;;  %2123 = vmatprep.subr.bf16.mxu0 %v2122_v39  ;;  %v242_v59 = vld [vmem:[#allocation2 + $0x168] sm:$0xff]  ;;  %v240_v60 = vld [vmem:[#allocation2 + $0x158] sm:$0xff]  ;;  %v2128_v62 = vpack.c.bf16 %v233_v54, %v229_v53  ;;  %v2324_v63 = vpack.c.bf16 %v235_v57, %v231_v55  ;;  %v237_v1 = vld [vmem:[#allocation2 + $0x140] sm:$0xff] }
  0xe9   :  { %2319 = vmatprep.subr.bf16.mxu1 %v2318_v43  ;;  %v244_v61 = vld [vmem:[#allocation2 + $0x178] sm:$0xff]  ;;  %v2130_v0 = vpack.c.bf16 %v242_v59, %v238_v58  ;;  %v241_v2 = vld [vmem:[#allocation2 + $0x160] sm:$0xff]  ;;  %v239_v3 = vld [vmem:[#allocation2 + $0x150] sm:$0xff] }
  0xea   :  { %v2326_v4 = vpack.c.bf16 %v244_v61, %v240_v60  ;;  %v243_v5 = vld [vmem:[#allocation2 + $0x170] sm:$0xff]  ;;  %v246_v6 = vld [vmem:[#allocation2 + $0x188] sm:$0xff]  ;;  %v248_v8 = vld [vmem:[#allocation2 + $0x198] sm:$0xff]  ;;  %v2132_v10 = vpack.c.bf16 %v241_v2, %v237_v1  ;;  %v3318_v61 = vshrl.u32 %v591_v46, 7 }
  0xeb   :  { %2125 = vmatpush1.bf16.msra.mxu0 %v2124_v50  ;;  %v250_v7 = vld [vmem:[#allocation2 + $0x1a8] sm:$0xff]  ;;  %v252_v9 = vld [vmem:[#allocation2 + $0x1b8] sm:$0xff]  ;;  %v2328_v11 = vpack.c.bf16 %v243_v5, %v239_v3  ;;  %v245_v13 = vld [vmem:[#allocation2 + $0x180] sm:$0xff] }
  0xec   :  { %2321 = vmatpush1.bf16.msra.mxu1 %v2320_v51  ;;  %2127 = vmatprep.subr.bf16.mxu0 %v2126_v52  ;;  %v2134_v12 = vpack.c.bf16 %v250_v7, %v246_v6  ;;  %v249_v14 = vld [vmem:[#allocation2 + $0x1a0] sm:$0xff]  ;;  %v247_v15 = vld [vmem:[#allocation2 + $0x190] sm:$0xff]  ;;  %v2330_v16 = vpack.c.bf16 %v252_v9, %v248_v8  ;;  %v254_v18 = vld [vmem:[#allocation2 + $0x1c8] sm:$0xff] }
  0xed   :  { %2323 = vmatprep.subr.bf16.mxu1 %v2322_v56  ;;  %v251_v17 = vld [vmem:[#allocation2 + $0x1b0] sm:$0xff]  ;;  %v258_v19 = vld [vmem:[#allocation2 + $0x1e8] sm:$0xff]  ;;  %v256_v20 = vld [vmem:[#allocation2 + $0x1d8] sm:$0xff]  ;;  %v2136_v22 = vpack.c.bf16 %v249_v14, %v245_v13 }
  0xee   :  { %v260_v21 = vld [vmem:[#allocation2 + $0x1f8] sm:$0xff]  ;;  %v2332_v23 = vpack.c.bf16 %v251_v17, %v247_v15  ;;  %v2138_v24 = vpack.c.bf16 %v258_v19, %v254_v18  ;;  %v253_v25 = vld [vmem:[#allocation2 + $0x1c0] sm:$0xff]  ;;  %v255_v27 = vld [vmem:[#allocation2 + $0x1d0] sm:$0xff] }
  0xef   :  { %2129 = vmatpush1.bf16.msra.mxu0 %v2128_v62  ;;  %v257_v26 = vld [vmem:[#allocation2 + $0x1e0] sm:$0xff]  ;;  %v2334_v28 = vpack.c.bf16 %v260_v21, %v256_v20  ;;  %v259_v29 = vld [vmem:[#allocation2 + $0x1f0] sm:$0xff]  ;;  %v262_v30 = vld [vmem:[#allocation2 + $0x208] sm:$0xff]  ;;  %v616_v62 = vunpack.c.0.s8 %v615_v48 }
  0xf0   :  { %2325 = vmatpush1.bf16.msra.mxu1 %v2324_v63  ;;  %2131 = vmatprep.subr.bf16.mxu0 %v2130_v0  ;;  %v266_v31 = vld [vmem:[#allocation2 + $0x228] sm:$0xff]  ;;  %v264_v32 = vld [vmem:[#allocation2 + $0x218] sm:$0xff]  ;;  %v2140_v34 = vpack.c.bf16 %v257_v26, %v253_v25  ;;  %v2336_v35 = vpack.c.bf16 %v259_v29, %v255_v27  ;;  %v261_v37 = vld [vmem:[#allocation2 + $0x200] sm:$0xff] }
  0xf1   :  { %2327 = vmatprep.subr.bf16.mxu1 %v2326_v4  ;;  %v268_v33 = vld [vmem:[#allocation2 + $0x238] sm:$0xff]  ;;  %v2142_v36 = vpack.c.bf16 %v266_v31, %v262_v30  ;;  %v265_v38 = vld [vmem:[#allocation2 + $0x220] sm:$0xff]  ;;  %v263_v39 = vld [vmem:[#allocation2 + $0x210] sm:$0xff] }
  0xf2   :  { %v2338_v40 = vpack.c.bf16 %v268_v33, %v264_v32  ;;  %v267_v41 = vld [vmem:[#allocation2 + $0x230] sm:$0xff]  ;;  %v270_v42 = vld [vmem:[#allocation2 + $0x248] sm:$0xff]  ;;  %v272_v44 = vld [vmem:[#allocation2 + $0x258] sm:$0xff]  ;;  %v2144_v49 = vpack.c.bf16 %v265_v38, %v261_v37 }
  0xf3   :  { %2133 = vmatpush1.bf16.msra.mxu0 %v2132_v10  ;;  %v274_v43 = vld [vmem:[#allocation2 + $0x268] sm:$0xff]  ;;  %v276_v45 = vld [vmem:[#allocation2 + $0x278] sm:$0xff]  ;;  %v2340_v50 = vpack.c.bf16 %v267_v41, %v263_v39  ;;  %v269_v52 = vld [vmem:[#allocation2 + $0x240] sm:$0xff] }
  0xf4   :  { %2329 = vmatpush1.bf16.msra.mxu1 %v2328_v11  ;;  %2135 = vmatprep.subr.bf16.mxu0 %v2134_v12  ;;  %v2146_v51 = vpack.c.bf16 %v274_v43, %v270_v42  ;;  %v273_v53 = vld [vmem:[#allocation2 + $0x260] sm:$0xff]  ;;  %v271_v54 = vld [vmem:[#allocation2 + $0x250] sm:$0xff]  ;;  %v2342_v55 = vpack.c.bf16 %v276_v45, %v272_v44  ;;  %v278_v57 = vld [vmem:[#allocation2 + $0x288] sm:$0xff]  ;;  %v3321_v11 = vsub.s32 %v616_v62, %v3318_v61 }
  0xf5   :  { %2331 = vmatprep.subr.bf16.mxu1 %v2330_v16  ;;  %v275_v56 = vld [vmem:[#allocation2 + $0x270] sm:$0xff]  ;;  %v282_v58 = vld [vmem:[#allocation2 + $0x2a8] sm:$0xff]  ;;  %v280_v59 = vld [vmem:[#allocation2 + $0x298] sm:$0xff]  ;;  %v2148_v63 = vpack.c.bf16 %v273_v53, %v269_v52 }
  0xf6   :  { %v284_v60 = vld [vmem:[#allocation2 + $0x2b8] sm:$0xff]  ;;  %v2344_v0 = vpack.c.bf16 %v275_v56, %v271_v54  ;;  %v2150_v1 = vpack.c.bf16 %v282_v58, %v278_v57  ;;  %v277_v2 = vld [vmem:[#allocation2 + $0x280] sm:$0xff]  ;;  %v279_v4 = vld [vmem:[#allocation2 + $0x290] sm:$0xff] }
  0xf7   :  { %2137 = vmatpush1.bf16.msra.mxu0 %v2136_v22  ;;  %v281_v3 = vld [vmem:[#allocation2 + $0x2a0] sm:$0xff]  ;;  %v2346_v5 = vpack.c.bf16 %v284_v60, %v280_v59  ;;  %v283_v6 = vld [vmem:[#allocation2 + $0x2b0] sm:$0xff]  ;;  %v286_v7 = vld [vmem:[#allocation2 + $0x2c8] sm:$0xff] }
  0xf8   :  { %2333 = vmatpush1.bf16.msra.mxu1 %v2332_v23  ;;  %2139 = vmatprep.subr.bf16.mxu0 %v2138_v24  ;;  %v290_v8 = vld [vmem:[#allocation2 + $0x2e8] sm:$0xff]  ;;  %v288_v9 = vld [vmem:[#allocation2 + $0x2d8] sm:$0xff]  ;;  %v2152_v12 = vpack.c.bf16 %v281_v3, %v277_v2  ;;  %v285_v13 = vld [vmem:[#allocation2 + $0x2c0] sm:$0xff]  ;;  %v2348_v14 = vpack.c.bf16 %v283_v6, %v279_v4 }
  0xf9   :  { %2335 = vmatprep.subr.bf16.mxu1 %v2334_v28  ;;  %v292_v10 = vld [vmem:[#allocation2 + $0x2f8] sm:$0xff]  ;;  %v2154_v15 = vpack.c.bf16 %v290_v8, %v286_v7  ;;  %v289_v16 = vld [vmem:[#allocation2 + $0x2e0] sm:$0xff]  ;;  %v287_v17 = vld [vmem:[#allocation2 + $0x2d0] sm:$0xff] }
  0xfa   :  { %v291_v18 = vld [vmem:[#allocation2 + $0x2f0] sm:$0xff]  ;;  %v2350_v19 = vpack.c.bf16 %v292_v10, %v288_v9  ;;  %v294_v20 = vld [vmem:[#allocation2 + $0x308] sm:$0xff]  ;;  %v3326_v22 = vld [vmem:[%s3417_s0] sm:$0xff]  ;;  %v2156_v26 = vpack.c.bf16 %v289_v16, %v285_v13 }
  0xfb   :  { %2141 = vmatpush1.bf16.msra.mxu0 %v2140_v34  ;;  %v298_v21 = vld [vmem:[#allocation2 + $0x328] sm:$0xff]  ;;  %v296_v23 = vld [vmem:[#allocation2 + $0x318] sm:$0xff]  ;;  %v3330_v25 = vrot.slane %v3326_v22, %v3321_v11  ;;  %v2352_v27 = vpack.c.bf16 %v291_v18, %v287_v17  ;;  %v293_v29 = vld [vmem:[#allocation2 + $0x300] sm:$0xff]  ;;  %v613_v8 = vcombine.high %v3326_v22, %v3326_v22 }
  0xfc   :  { %2337 = vmatpush1.bf16.msra.mxu1 %v2336_v35  ;;  %2143 = vmatprep.subr.bf16.mxu0 %v2142_v36  ;;  %v300_v24 = vld [vmem:[#allocation2 + $0x338] sm:$0xff]  ;;  %v2158_v28 = vpack.c.bf16 %v298_v21, %v294_v20  ;;  %v297_v30 = vld [vmem:[#allocation2 + $0x320] sm:$0xff]  ;;  %v295_v31 = vld [vmem:[#allocation2 + $0x310] sm:$0xff] }
  0xfd   :  { %2339 = vmatprep.subr.bf16.mxu1 %v2338_v40  ;;  %v628_v32 = vcombine.high %v3330_v25, %v3330_v25  ;;  %v2354_v33 = vpack.c.bf16 %v300_v24, %v296_v23  ;;  %v299_v34 = vld [vmem:[#allocation2 + $0x330] sm:$0xff]  ;;  %v302_v35 = vld [vmem:[#allocation2 + $0x348] sm:$0xff]  ;;  %v304_v37 = vld [vmem:[#allocation2 + $0x358] sm:$0xff]  ;;  %v2160_v39 = vpack.c.bf16 %v297_v30, %v293_v29  ;;  %v3337_v22 = vrot.slane %v613_v8, %v3321_v11 }
  0xfe   :  { %v306_v36 = vld [vmem:[#allocation2 + $0x368] sm:$0xff]  ;;  %v308_v38 = vld [vmem:[#allocation2 + $0x378] sm:$0xff]  ;;  %v2356_v40 = vpack.c.bf16 %v299_v34, %v295_v31  ;;  %v301_v42 = vld [vmem:[#allocation2 + $0x340] sm:$0xff] }
  0xff   :  { %2145 = vmatpush1.bf16.msra.mxu0 %v2144_v49  ;;  %719 = vmatprep.mubr.f32.mxu0 %v628_v32  ;;  %v2162_v41 = vpack.c.bf16 %v306_v36, %v302_v35  ;;  %v305_v43 = vld [vmem:[#allocation2 + $0x360] sm:$0xff]  ;;  %v303_v44 = vld [vmem:[#allocation2 + $0x350] sm:$0xff]  ;;  %v2358_v45 = vpack.c.bf16 %v308_v38, %v304_v37  ;;  %v310_v47 = vld [vmem:[#allocation2 + $0x388] sm:$0xff]  ;;  %v629_v38 = vcombine.high %v3337_v22, %v3337_v22 }
 0x100   :  { %2341 = vmatpush1.bf16.msra.mxu1 %v2340_v50  ;;  %2147 = vmatprep.subr.bf16.mxu0 %v2146_v51  ;;  %v307_v46 = vld [vmem:[#allocation2 + $0x370] sm:$0xff]  ;;  %v314_v48 = vld [vmem:[#allocation2 + $0x3a8] sm:$0xff]  ;;  %v312_v49 = vld [vmem:[#allocation2 + $0x398] sm:$0xff]  ;;  %v2164_v51 = vpack.c.bf16 %v305_v43, %v301_v42 }
 0x101   :  { %2343 = vmatprep.subr.bf16.mxu1 %v2342_v55  ;;  %1003 = vmatprep.mubr.f32.mxu1 %v628_v32  ;;  %v316_v50 = vld [vmem:[#allocation2 + $0x3b8] sm:$0xff]  ;;  %v2360_v52 = vpack.c.bf16 %v307_v46, %v303_v44  ;;  %v2166_v53 = vpack.c.bf16 %v314_v48, %v310_v47  ;;  %v309_v54 = vld [vmem:[#allocation2 + $0x380] sm:$0xff]  ;;  %v311_v56 = vld [vmem:[#allocation2 + $0x390] sm:$0xff] }
 0x102   :  { %v313_v55 = vld [vmem:[#allocation2 + $0x3a0] sm:$0xff]  ;;  %v2362_v57 = vpack.c.bf16 %v316_v50, %v312_v49  ;;  %v315_v58 = vld [vmem:[#allocation2 + $0x3b0] sm:$0xff]  ;;  %v318_v59 = vld [vmem:[#allocation2 + $0x3c8] sm:$0xff] }
 0x103   :  { %2149 = vmatpush1.bf16.msra.mxu0 %v2148_v63  ;;  %v322_v60 = vld [vmem:[#allocation2 + $0x3e8] sm:$0xff]  ;;  %v320_v62 = vld [vmem:[#allocation2 + $0x3d8] sm:$0xff]  ;;  %v317_v3 = vld [vmem:[#allocation2 + $0x3c0] sm:$0xff] }
 0x104   :  { %2345 = vmatpush1.bf16.msra.mxu1 %v2344_v0  ;;  %2151 = vmatprep.subr.bf16.mxu0 %v2150_v1  ;;  %v324_v63 = vld [vmem:[#allocation2 + $0x3f8] sm:$0xff]  ;;  %v2168_v0 = vpack.c.bf16 %v313_v55, %v309_v54  ;;  %v2364_v1 = vpack.c.bf16 %v315_v58, %v311_v56  ;;  %v2170_v2 = vpack.c.bf16 %v322_v60, %v318_v59  ;;  %v321_v4 = vld [vmem:[#allocation2 + $0x3e0] sm:$0xff]  ;;  %v323_v7 = vld [vmem:[#allocation2 + $0x3f0] sm:$0xff] }
 0x105   :  { %2347 = vmatprep.subr.bf16.mxu1 %v2346_v5  ;;  %v319_v5 = vld [vmem:[#allocation2 + $0x3d0] sm:$0xff]  ;;  %v2366_v6 = vpack.c.bf16 %v324_v63, %v320_v62  ;;  %v326_v9 = vld [vmem:[#allocation2 + $0x408] sm:$0xff]  ;;  %v332_v13 = vld [vmem:[#allocation2 + $0x438] sm:$0xff] }
 0x106   :  { %v330_v10 = vld [vmem:[#allocation2 + $0x428] sm:$0xff]  ;;  %v325_v17 = vld [vmem:[#allocation2 + $0x400] sm:$0xff]  ;;  %v331_v21 = vld [vmem:[#allocation2 + $0x430] sm:$0xff] }
 0x107   :  { %2153 = vmatpush1.bf16.msra.mxu0 %v2152_v12  ;;  %v328_v12 = vld [vmem:[#allocation2 + $0x418] sm:$0xff]  ;;  %v2174_v16 = vpack.c.bf16 %v330_v10, %v326_v9  ;;  %v329_v18 = vld [vmem:[#allocation2 + $0x420] sm:$0xff]  ;;  %v334_v23 = vld [vmem:[#allocation2 + $0x448] sm:$0xff] }
 0x108   :  { %2349 = vmatpush1.bf16.msra.mxu1 %v2348_v14  ;;  %2155 = vmatprep.subr.bf16.mxu0 %v2154_v15  ;;  %v2172_v14 = vpack.c.bf16 %v321_v4, %v317_v3  ;;  %v2368_v15 = vpack.c.bf16 %v323_v7, %v319_v5  ;;  %v2370_v20 = vpack.c.bf16 %v332_v13, %v328_v12  ;;  %v338_v24 = vld [vmem:[#allocation2 + $0x468] sm:$0xff]  ;;  %v333_v31 = vld [vmem:[#allocation2 + $0x440] sm:$0xff]  ;;  %v339_v35 = vld [vmem:[#allocation2 + $0x470] sm:$0xff] }
 0x109   :  { %2351 = vmatprep.subr.bf16.mxu1 %v2350_v19  ;;  %v327_v19 = vld [vmem:[#allocation2 + $0x410] sm:$0xff]  ;;  %v2178_v30 = vpack.c.bf16 %v338_v24, %v334_v23  ;;  %v337_v32 = vld [vmem:[#allocation2 + $0x460] sm:$0xff]  ;;  %v342_v36 = vld [vmem:[#allocation2 + $0x488] sm:$0xff] }
 0x10a   :  { %v2372_v29 = vpack.c.bf16 %v331_v21, %v327_v19  ;;  %v346_v37 = vld [vmem:[#allocation2 + $0x4a8] sm:$0xff]  ;;  %v341_v44 = vld [vmem:[#allocation2 + $0x480] sm:$0xff]  ;;  %v343_v46 = vld [vmem:[#allocation2 + $0x490] sm:$0xff] }
 0x10b   :  { %2157 = vmatpush1.bf16.msra.mxu0 %v2156_v26  ;;  %v336_v26 = vld [vmem:[#allocation2 + $0x458] sm:$0xff]  ;;  %v2182_v43 = vpack.c.bf16 %v346_v37, %v342_v36  ;;  %v347_v48 = vld [vmem:[#allocation2 + $0x4b0] sm:$0xff]  ;;  %v350_v49 = vld [vmem:[#allocation2 + $0x4c8] sm:$0xff] }
 0x10c   :  { %2353 = vmatpush1.bf16.msra.mxu1 %v2352_v27  ;;  %2159 = vmatprep.subr.bf16.mxu0 %v2158_v28  ;;  %v340_v27 = vld [vmem:[#allocation2 + $0x478] sm:$0xff]  ;;  %v2176_v28 = vpack.c.bf16 %v329_v18, %v325_v17  ;;  %v354_v50 = vld [vmem:[#allocation2 + $0x4e8] sm:$0xff]  ;;  %v349_v55 = vld [vmem:[#allocation2 + $0x4c0] sm:$0xff] }
 0x10d   :  { %2355 = vmatprep.subr.bf16.mxu1 %v2354_v33  ;;  %v335_v33 = vld [vmem:[#allocation2 + $0x450] sm:$0xff]  ;;  %v2374_v34 = vpack.c.bf16 %v340_v27, %v336_v26  ;;  %v2186_v54 = vpack.c.bf16 %v354_v50, %v350_v49  ;;  %v353_v56 = vld [vmem:[#allocation2 + $0x4e0] sm:$0xff]  ;;  %v358_v60 = vld [vmem:[#allocation2 + $0x508] sm:$0xff] }
 0x10e   :  { %v2376_v42 = vpack.c.bf16 %v339_v35, %v335_v33  ;;  %v355_v59 = vld [vmem:[#allocation2 + $0x4f0] sm:$0xff]  ;;  %v362_v62 = vld [vmem:[#allocation2 + $0x528] sm:$0xff]  ;;  %v360_v63 = vld [vmem:[#allocation2 + $0x518] sm:$0xff] }
 0x10f   :  { %2161 = vmatpush1.bf16.msra.mxu0 %v2160_v39  ;;  %v344_v39 = vld [vmem:[#allocation2 + $0x498] sm:$0xff]  ;;  %v2190_v3 = vpack.c.bf16 %v362_v62, %v358_v60  ;;  %v357_v4 = vld [vmem:[#allocation2 + $0x500] sm:$0xff]  ;;  %v363_v8 = vld [vmem:[#allocation2 + $0x530] sm:$0xff] }
 0x110   :  { %2357 = vmatpush1.bf16.msra.mxu1 %v2356_v40  ;;  %2163 = vmatprep.subr.bf16.mxu0 %v2162_v41  ;;  %v348_v40 = vld [vmem:[#allocation2 + $0x4b8] sm:$0xff]  ;;  %v2180_v41 = vpack.c.bf16 %v337_v32, %v333_v31  ;;  %v361_v5 = vld [vmem:[#allocation2 + $0x520] sm:$0xff]  ;;  %v366_v9 = vld [vmem:[#allocation2 + $0x548] sm:$0xff] }
 0x111   :  { %2359 = vmatprep.subr.bf16.mxu1 %v2358_v45  ;;  %v345_v45 = vld [vmem:[#allocation2 + $0x4a0] sm:$0xff]  ;;  %v2378_v47 = vpack.c.bf16 %v348_v40, %v344_v39  ;;  %v370_v10 = vld [vmem:[#allocation2 + $0x568] sm:$0xff]  ;;  %v368_v12 = vld [vmem:[#allocation2 + $0x558] sm:$0xff] }
 0x112   :  { %v372_v13 = vld [vmem:[#allocation2 + $0x578] sm:$0xff]  ;;  %v365_v17 = vld [vmem:[#allocation2 + $0x540] sm:$0xff]  ;;  %v367_v19 = vld [vmem:[#allocation2 + $0x550] sm:$0xff] }
 0x113   :  { %2165 = vmatpush1.bf16.msra.mxu0 %v2164_v51  ;;  %v352_v51 = vld [vmem:[#allocation2 + $0x4d8] sm:$0xff]  ;;  %v369_v18 = vld [vmem:[#allocation2 + $0x560] sm:$0xff]  ;;  %v371_v21 = vld [vmem:[#allocation2 + $0x570] sm:$0xff] }
 0x114   :  { %2361 = vmatpush1.bf16.msra.mxu1 %v2360_v52  ;;  %2167 = vmatprep.subr.bf16.mxu0 %v2166_v53  ;;  %v356_v52 = vld [vmem:[#allocation2 + $0x4f8] sm:$0xff]  ;;  %v2184_v53 = vpack.c.bf16 %v345_v45, %v341_v44  ;;  %v374_v23 = vld [vmem:[#allocation2 + $0x588] sm:$0xff]  ;;  %v373_v31 = vld [vmem:[#allocation2 + $0x580] sm:$0xff] }
 0x115   :  { %2363 = vmatprep.subr.bf16.mxu1 %v2362_v57  ;;  %v351_v57 = vld [vmem:[#allocation2 + $0x4d0] sm:$0xff]  ;;  %v2382_v58 = vpack.c.bf16 %v356_v52, %v352_v51  ;;  %v378_v24 = vld [vmem:[#allocation2 + $0x5a8] sm:$0xff]  ;;  %v376_v26 = vld [vmem:[#allocation2 + $0x598] sm:$0xff] }
 0x116   :  { %v380_v27 = vld [vmem:[#allocation2 + $0x5b8] sm:$0xff]  ;;  %v377_v32 = vld [vmem:[#allocation2 + $0x5a0] sm:$0xff]  ;;  %v375_v33 = vld [vmem:[#allocation2 + $0x590] sm:$0xff] }
 0x117   :  { %2169 = vmatpush1.bf16.msra.mxu0 %v2168_v0  ;;  %v364_v0 = vld [vmem:[#allocation2 + $0x538] sm:$0xff]  ;;  %v379_v35 = vld [vmem:[#allocation2 + $0x5b0] sm:$0xff]  ;;  %v382_v36 = vld [vmem:[#allocation2 + $0x5c8] sm:$0xff]  ;;  %v2200_v40 = vpack.c.bf16 %v377_v32, %v373_v31 }
 0x118   :  { %2365 = vmatpush1.bf16.msra.mxu1 %v2364_v1  ;;  %2171 = vmatprep.subr.bf16.mxu0 %v2170_v2  ;;  %v2188_v1 = vpack.c.bf16 %v353_v56, %v349_v55  ;;  %v2384_v2 = vpack.c.bf16 %v355_v59, %v351_v57  ;;  %v2386_v7 = vpack.c.bf16 %v364_v0, %v360_v63  ;;  %v386_v37 = vld [vmem:[#allocation2 + $0x5e8] sm:$0xff]  ;;  %v388_v39 = vld [vmem:[#allocation2 + $0x5f8] sm:$0xff]  ;;  %v385_v44 = vld [vmem:[#allocation2 + $0x5e0] sm:$0xff] }
 0x119   :  { %2367 = vmatprep.subr.bf16.mxu1 %v2366_v6  ;;  %v359_v6 = vld [vmem:[#allocation2 + $0x510] sm:$0xff]  ;;  %v394_v49 = vld [vmem:[#allocation2 + $0x628] sm:$0xff]  ;;  %v392_v50 = vld [vmem:[#allocation2 + $0x618] sm:$0xff] }
 0x11a   :  { %v383_v45 = vld [vmem:[#allocation2 + $0x5d0] sm:$0xff]  ;;  %v396_v51 = vld [vmem:[#allocation2 + $0x638] sm:$0xff]  ;;  %v393_v55 = vld [vmem:[#allocation2 + $0x620] sm:$0xff] }
 0x11b   :  { %2173 = vmatpush1.bf16.msra.mxu0 %v2172_v14  ;;  %v2192_v14 = vpack.c.bf16 %v361_v5, %v357_v4  ;;  %v391_v56 = vld [vmem:[#allocation2 + $0x610] sm:$0xff]  ;;  %v2402_v57 = vpack.c.bf16 %v396_v51, %v392_v50  ;;  %v398_v59 = vld [vmem:[#allocation2 + $0x648] sm:$0xff]  ;;  %v400_v62 = vld [vmem:[#allocation2 + $0x658] sm:$0xff] }
 0x11c   :  { %2369 = vmatpush1.bf16.msra.mxu1 %v2368_v15  ;;  %2175 = vmatprep.subr.bf16.mxu0 %v2174_v16  ;;  %v2388_v15 = vpack.c.bf16 %v363_v8, %v359_v6  ;;  %v2194_v16 = vpack.c.bf16 %v370_v10, %v366_v9  ;;  %v402_v60 = vld [vmem:[#allocation2 + $0x668] sm:$0xff]  ;;  %v404_v63 = vld [vmem:[#allocation2 + $0x678] sm:$0xff]  ;;  %v401_v4 = vld [vmem:[#allocation2 + $0x660] sm:$0xff] }
 0x11d   :  { %2371 = vmatprep.subr.bf16.mxu1 %v2370_v20  ;;  %v2390_v20 = vpack.c.bf16 %v372_v13, %v368_v12  ;;  %v399_v5 = vld [vmem:[#allocation2 + $0x650] sm:$0xff]  ;;  %v2406_v6 = vpack.c.bf16 %v404_v63, %v400_v62  ;;  %v406_v8 = vld [vmem:[#allocation2 + $0x688] sm:$0xff]  ;;  %v408_v10 = vld [vmem:[#allocation2 + $0x698] sm:$0xff] }
 0x11e   :  { %720 = vmatmul.mubr.f32.vlgmr.msra.gmra.mrb[0].mxu0 %v3330_v25  ;;  %v410_v9 = vld [vmem:[#allocation2 + $0x6a8] sm:$0xff]  ;;  %v412_v12 = vld [vmem:[#allocation2 + $0x6b8] sm:$0xff]  ;;  %v417_v31 = vld [vmem:[#allocation2 + $0x6e0] sm:$0xff] }
 0x11f   :  { %2177 = vmatpush1.bf16.msra.mxu0 %v2176_v28  ;;  %1004 = vmatmul.mubr.f32.vlgmr.msra.gmra.mrb[0].mxu1 %v3330_v25  ;;  %v2380_v25 = vpack.c.bf16 %v347_v48, %v343_v46  ;;  %v2196_v28 = vpack.c.bf16 %v369_v18, %v365_v17  ;;  %v390_v48 = vld [vmem:[#allocation2 + $0x608] sm:$0xff]  ;;  %v409_v17 = vld [vmem:[#allocation2 + $0x6a0] sm:$0xff]  ;;  %v407_v18 = vld [vmem:[#allocation2 + $0x690] sm:$0xff] }
 0x120   :  { %2373 = vmatpush1.bf16.msra.mxu1 %v2372_v29  ;;  %2179 = vmatprep.subr.bf16.mxu0 %v2178_v30  ;;  %v2392_v29 = vpack.c.bf16 %v371_v21, %v367_v19  ;;  %v2198_v30 = vpack.c.bf16 %v378_v24, %v374_v23  ;;  %v2410_v19 = vpack.c.bf16 %v412_v12, %v408_v10  ;;  %v414_v21 = vld [vmem:[#allocation2 + $0x6c8] sm:$0xff]  ;;  %v416_v24 = vld [vmem:[#allocation2 + $0x6d8] sm:$0xff]  ;;  %v415_v32 = vld [vmem:[#allocation2 + $0x6d0] sm:$0xff] }
 0x121   :  { %2375 = vmatprep.subr.bf16.mxu1 %v2374_v34  ;;  %790 = vmatprep.mubr.f32.mxu0 %v629_v38  ;;  %v2394_v34 = vpack.c.bf16 %v380_v27, %v376_v26  ;;  %v418_v23 = vld [vmem:[#allocation2 + $0x6e8] sm:$0xff]  ;;  %v420_v26 = vld [vmem:[#allocation2 + $0x6f8] sm:$0xff] }
 0x122   :  { %1074 = vmatprep.mubr.f32.mxu1 %v629_v38  ;;  %v384_v38 = vld [vmem:[#allocation2 + $0x5d8] sm:$0xff] }
 0x123   :  { %2181 = vmatpush1.bf16.msra.mxu0 %v2180_v41  ;;  %v2396_v41 = vpack.c.bf16 %v379_v35, %v375_v33  ;;  %v2398_v46 = vpack.c.bf16 %v388_v39, %v384_v38  ;;  %v2414_v33 = vpack.c.bf16 %v420_v26, %v416_v24  ;;  %v422_v35 = vld [vmem:[#allocation2 + $0x708] sm:$0xff]  ;;  %v428_v38 = vld [vmem:[#allocation2 + $0x738] sm:$0xff] }
 0x124   :  { %2377 = vmatpush1.bf16.msra.mxu1 %v2376_v42  ;;  %2183 = vmatprep.subr.bf16.mxu0 %v2182_v43  ;;  %v2202_v42 = vpack.c.bf16 %v386_v37, %v382_v36  ;;  %v381_v43 = vld [vmem:[#allocation2 + $0x5c0] sm:$0xff]  ;;  %v426_v36 = vld [vmem:[#allocation2 + $0x728] sm:$0xff]  ;;  %v424_v37 = vld [vmem:[#allocation2 + $0x718] sm:$0xff] }
 0x125   :  { %2379 = vmatprep.subr.bf16.mxu1 %v2378_v47  ;;  %v387_v47 = vld [vmem:[#allocation2 + $0x5f0] sm:$0xff]  ;;  %v2204_v52 = vpack.c.bf16 %v385_v44, %v381_v43  ;;  %v425_v43 = vld [vmem:[#allocation2 + $0x720] sm:$0xff]  ;;  %v436_v50 = vld [vmem:[#allocation2 + $0x778] sm:$0xff] }
 0x126   :  { %v423_v44 = vld [vmem:[#allocation2 + $0x710] sm:$0xff]  ;;  %v444_v62 = vld [vmem:[#allocation2 + $0x7b8] sm:$0xff] }
 0x127   :  { %2185 = vmatpush1.bf16.msra.mxu0 %v2184_v53  ;;  %v2400_v53 = vpack.c.bf16 %v387_v47, %v383_v45  ;;  %v2418_v45 = vpack.c.bf16 %v428_v38, %v424_v37  ;;  %v430_v47 = vld [vmem:[#allocation2 + $0x748] sm:$0xff]  ;;  %v452_v10 = vld [vmem:[#allocation2 + $0x7f8] sm:$0xff] }
 0x128   :  { %2381 = vmatpush1.bf16.msra.mxu1 %v2380_v25  ;;  %2187 = vmatprep.subr.bf16.mxu0 %v2186_v54  ;;  %v2206_v25 = vpack.c.bf16 %v394_v49, %v390_v48  ;;  %v389_v54 = vld [vmem:[#allocation2 + $0x600] sm:$0xff]  ;;  %v434_v48 = vld [vmem:[#allocation2 + $0x768] sm:$0xff]  ;;  %v432_v49 = vld [vmem:[#allocation2 + $0x758] sm:$0xff] }
 0x129   :  { %2383 = vmatprep.subr.bf16.mxu1 %v2382_v58  ;;  %v395_v58 = vld [vmem:[#allocation2 + $0x630] sm:$0xff]  ;;  %v2208_v0 = vpack.c.bf16 %v393_v55, %v389_v54  ;;  %v433_v54 = vld [vmem:[#allocation2 + $0x760] sm:$0xff]  ;;  %v460_v24 = vld [vmem:[#allocation2 + $0x838] sm:$0xff] }
 0x12a   :  { %v431_v55 = vld [vmem:[#allocation2 + $0x750] sm:$0xff]  ;;  %v468_v37 = vld [vmem:[#allocation2 + $0x878] sm:$0xff] }
 0x12b   :  { %2189 = vmatpush1.bf16.msra.mxu0 %v2188_v1  ;;  %v2404_v1 = vpack.c.bf16 %v395_v58, %v391_v56  ;;  %v2422_v56 = vpack.c.bf16 %v436_v50, %v432_v49  ;;  %v438_v58 = vld [vmem:[#allocation2 + $0x788] sm:$0xff]  ;;  %v472_v50 = vld [vmem:[#allocation2 + $0x898] sm:$0xff] }
 0x12c   :  { %2385 = vmatpush1.bf16.msra.mxu1 %v2384_v2  ;;  %2191 = vmatprep.subr.bf16.mxu0 %v2190_v3  ;;  %v2210_v2 = vpack.c.bf16 %v402_v60, %v398_v59  ;;  %v397_v3 = vld [vmem:[#allocation2 + $0x640] sm:$0xff]  ;;  %v442_v59 = vld [vmem:[#allocation2 + $0x7a8] sm:$0xff]  ;;  %v440_v60 = vld [vmem:[#allocation2 + $0x798] sm:$0xff] }
 0x12d   :  { %2387 = vmatprep.subr.bf16.mxu1 %v2386_v7  ;;  %v403_v7 = vld [vmem:[#allocation2 + $0x670] sm:$0xff]  ;;  %v2212_v13 = vpack.c.bf16 %v401_v4, %v397_v3  ;;  %v441_v3 = vld [vmem:[#allocation2 + $0x7a0] sm:$0xff]  ;;  %v474_v49 = vld [vmem:[#allocation2 + $0x8a8] sm:$0xff] }
 0x12e   :  { %v439_v4 = vld [vmem:[#allocation2 + $0x790] sm:$0xff] }
 0x12f   :  { %2193 = vmatpush1.bf16.msra.mxu0 %v2192_v14  ;;  %v2408_v14 = vpack.c.bf16 %v403_v7, %v399_v5  ;;  %v2426_v5 = vpack.c.bf16 %v444_v62, %v440_v60  ;;  %v446_v7 = vld [vmem:[#allocation2 + $0x7c8] sm:$0xff] }
 0x130   :  { %2389 = vmatpush1.bf16.msra.mxu1 %v2388_v15  ;;  %2195 = vmatprep.subr.bf16.mxu0 %v2194_v16  ;;  %v2214_v15 = vpack.c.bf16 %v410_v9, %v406_v8  ;;  %v405_v16 = vld [vmem:[#allocation2 + $0x680] sm:$0xff]  ;;  %v450_v8 = vld [vmem:[#allocation2 + $0x7e8] sm:$0xff]  ;;  %v448_v9 = vld [vmem:[#allocation2 + $0x7d8] sm:$0xff] }
 0x131   :  { %2391 = vmatprep.subr.bf16.mxu1 %v2390_v20  ;;  %v411_v20 = vld [vmem:[#allocation2 + $0x6b0] sm:$0xff]  ;;  %v2216_v27 = vpack.c.bf16 %v409_v17, %v405_v16  ;;  %v449_v16 = vld [vmem:[#allocation2 + $0x7e0] sm:$0xff]  ;;  %v478_v60 = vld [vmem:[#allocation2 + $0x8c8] sm:$0xff] }
 0x132   :  { %v447_v17 = vld [vmem:[#allocation2 + $0x7d0] sm:$0xff]  ;;  %v482_v62 = vld [vmem:[#allocation2 + $0x8e8] sm:$0xff] }
 0x133   :  { %2197 = vmatpush1.bf16.msra.mxu0 %v2196_v28  ;;  %v2412_v28 = vpack.c.bf16 %v411_v20, %v407_v18  ;;  %v2430_v18 = vpack.c.bf16 %v452_v10, %v448_v9  ;;  %v454_v20 = vld [vmem:[#allocation2 + $0x808] sm:$0xff]  ;;  %v488_v10 = vld [vmem:[#allocation2 + $0x918] sm:$0xff] }
 0x134   :  { %2393 = vmatpush1.bf16.msra.mxu1 %v2392_v29  ;;  %2199 = vmatprep.subr.bf16.mxu0 %v2198_v30  ;;  %v2218_v29 = vpack.c.bf16 %v418_v23, %v414_v21  ;;  %v413_v30 = vld [vmem:[#allocation2 + $0x6c0] sm:$0xff]  ;;  %v458_v21 = vld [vmem:[#allocation2 + $0x828] sm:$0xff]  ;;  %v456_v23 = vld [vmem:[#allocation2 + $0x818] sm:$0xff] }
 0x135   :  { %2395 = vmatprep.subr.bf16.mxu1 %v2394_v34  ;;  %v419_v34 = vld [vmem:[#allocation2 + $0x6f0] sm:$0xff]  ;;  %v2220_v39 = vpack.c.bf16 %v417_v31, %v413_v30  ;;  %v457_v30 = vld [vmem:[#allocation2 + $0x820] sm:$0xff]  ;;  %v490_v9 = vld [vmem:[#allocation2 + $0x928] sm:$0xff] }
 0x136   :  { %v455_v31 = vld [vmem:[#allocation2 + $0x810] sm:$0xff] }
 0x137   :  { %2201 = vmatpush1.bf16.msra.mxu0 %v2200_v40  ;;  %v2416_v40 = vpack.c.bf16 %v419_v34, %v415_v32  ;;  %v2434_v32 = vpack.c.bf16 %v460_v24, %v456_v23  ;;  %v462_v34 = vld [vmem:[#allocation2 + $0x848] sm:$0xff]  ;;  %v496_v24 = vld [vmem:[#allocation2 + $0x958] sm:$0xff] }
 0x138   :  { %2397 = vmatpush1.bf16.msra.mxu1 %v2396_v41  ;;  %2203 = vmatprep.subr.bf16.mxu0 %v2202_v42  ;;  %v2222_v41 = vpack.c.bf16 %v426_v36, %v422_v35  ;;  %v421_v42 = vld [vmem:[#allocation2 + $0x700] sm:$0xff]  ;;  %v466_v35 = vld [vmem:[#allocation2 + $0x868] sm:$0xff]  ;;  %v464_v36 = vld [vmem:[#allocation2 + $0x858] sm:$0xff] }
 0x139   :  { %2399 = vmatprep.subr.bf16.mxu1 %v2398_v46  ;;  %v427_v46 = vld [vmem:[#allocation2 + $0x730] sm:$0xff]  ;;  %v2224_v51 = vpack.c.bf16 %v425_v43, %v421_v42  ;;  %v461_v42 = vld [vmem:[#allocation2 + $0x840] sm:$0xff]  ;;  %v498_v23 = vld [vmem:[#allocation2 + $0x968] sm:$0xff] }
 0x13a   :  { %v465_v43 = vld [vmem:[#allocation2 + $0x860] sm:$0xff] }
 0x13b   :  { %2205 = vmatpush1.bf16.msra.mxu0 %v2204_v52  ;;  %v2420_v52 = vpack.c.bf16 %v427_v46, %v423_v44  ;;  %v463_v44 = vld [vmem:[#allocation2 + $0x850] sm:$0xff]  ;;  %v2438_v46 = vpack.c.bf16 %v468_v37, %v464_v36  ;;  %v506_v36 = vld [vmem:[#allocation2 + $0x9a8] sm:$0xff]  ;;  %v504_v37 = vld [vmem:[#allocation2 + $0x998] sm:$0xff] }
 0x13c   :  { %2401 = vmatpush1.bf16.msra.mxu1 %v2400_v53  ;;  %2207 = vmatprep.subr.bf16.mxu0 %v2206_v25  ;;  %v2226_v53 = vpack.c.bf16 %v434_v48, %v430_v47  ;;  %v429_v25 = vld [vmem:[#allocation2 + $0x740] sm:$0xff]  ;;  %v467_v47 = vld [vmem:[#allocation2 + $0x870] sm:$0xff]  ;;  %v470_v48 = vld [vmem:[#allocation2 + $0x888] sm:$0xff] }
 0x13d   :  { %2403 = vmatprep.subr.bf16.mxu1 %v2402_v57  ;;  %v435_v57 = vld [vmem:[#allocation2 + $0x770] sm:$0xff]  ;;  %v2228_v63 = vpack.c.bf16 %v433_v54, %v429_v25  ;;  %v2440_v25 = vpack.c.bf16 %v467_v47, %v463_v44  ;;  %v2246_v54 = vpack.c.bf16 %v474_v49, %v470_v48  ;;  %v505_v44 = vld [vmem:[#allocation2 + $0x9a0] sm:$0xff]  ;;  %v510_v49 = vld [vmem:[#allocation2 + $0x9c8] sm:$0xff] }
 0x13e   :  { %v507_v48 = vld [vmem:[#allocation2 + $0x9b0] sm:$0xff] }
 0x13f   :  { %2209 = vmatpush1.bf16.msra.mxu0 %v2208_v0  ;;  %v2424_v0 = vpack.c.bf16 %v435_v57, %v431_v55  ;;  %v469_v55 = vld [vmem:[#allocation2 + $0x880] sm:$0xff]  ;;  %v471_v57 = vld [vmem:[#allocation2 + $0x890] sm:$0xff] }
 0x140   :  { %2405 = vmatpush1.bf16.msra.mxu1 %v2404_v1  ;;  %2211 = vmatprep.subr.bf16.mxu0 %v2210_v2  ;;  %v2230_v1 = vpack.c.bf16 %v442_v59, %v438_v58  ;;  %v437_v2 = vld [vmem:[#allocation2 + $0x780] sm:$0xff]  ;;  %v475_v59 = vld [vmem:[#allocation2 + $0x8b0] sm:$0xff] }
 0x141   :  { %2407 = vmatprep.subr.bf16.mxu1 %v2406_v6  ;;  %v443_v6 = vld [vmem:[#allocation2 + $0x7b0] sm:$0xff]  ;;  %v2232_v12 = vpack.c.bf16 %v441_v3, %v437_v2  ;;  %v2250_v2 = vpack.c.bf16 %v482_v62, %v478_v60  ;;  %v477_v3 = vld [vmem:[#allocation2 + $0x8c0] sm:$0xff]  ;;  %v518_v60 = vld [vmem:[#allocation2 + $0xa08] sm:$0xff] }
 0x142   :  { %v522_v62 = vld [vmem:[#allocation2 + $0xa28] sm:$0xff] }
 0x143   :  { %2213 = vmatpush1.bf16.msra.mxu0 %v2212_v13  ;;  %v2428_v13 = vpack.c.bf16 %v443_v6, %v439_v4  ;;  %v481_v4 = vld [vmem:[#allocation2 + $0x8e0] sm:$0xff] }
 0x144   :  { %2409 = vmatpush1.bf16.msra.mxu1 %v2408_v14  ;;  %2215 = vmatprep.subr.bf16.mxu0 %v2214_v15  ;;  %v2234_v14 = vpack.c.bf16 %v450_v8, %v446_v7  ;;  %v445_v15 = vld [vmem:[#allocation2 + $0x7c0] sm:$0xff]  ;;  %v483_v7 = vld [vmem:[#allocation2 + $0x8f0] sm:$0xff]  ;;  %v486_v8 = vld [vmem:[#allocation2 + $0x908] sm:$0xff] }
 0x145   :  { %2411 = vmatprep.subr.bf16.mxu1 %v2410_v19  ;;  %v451_v19 = vld [vmem:[#allocation2 + $0x7f0] sm:$0xff]  ;;  %v2236_v26 = vpack.c.bf16 %v449_v16, %v445_v15  ;;  %v2254_v15 = vpack.c.bf16 %v490_v9, %v486_v8  ;;  %v485_v16 = vld [vmem:[#allocation2 + $0x900] sm:$0xff]  ;;  %v526_v8 = vld [vmem:[#allocation2 + $0xa48] sm:$0xff] }
 0x146   :  { %v530_v9 = vld [vmem:[#allocation2 + $0xa68] sm:$0xff] }
 0x147   :  { %2217 = vmatpush1.bf16.msra.mxu0 %v2216_v27  ;;  %v2432_v27 = vpack.c.bf16 %v451_v19, %v447_v17  ;;  %v489_v17 = vld [vmem:[#allocation2 + $0x920] sm:$0xff] }
 0x148   :  { %2413 = vmatpush1.bf16.msra.mxu1 %v2412_v28  ;;  %2219 = vmatprep.subr.bf16.mxu0 %v2218_v29  ;;  %v2238_v28 = vpack.c.bf16 %v458_v21, %v454_v20  ;;  %v453_v29 = vld [vmem:[#allocation2 + $0x800] sm:$0xff]  ;;  %v491_v20 = vld [vmem:[#allocation2 + $0x930] sm:$0xff]  ;;  %v494_v21 = vld [vmem:[#allocation2 + $0x948] sm:$0xff] }
 0x149   :  { %2415 = vmatprep.subr.bf16.mxu1 %v2414_v33  ;;  %v459_v33 = vld [vmem:[#allocation2 + $0x830] sm:$0xff]  ;;  %v2240_v38 = vpack.c.bf16 %v457_v30, %v453_v29  ;;  %v2258_v29 = vpack.c.bf16 %v498_v23, %v494_v21  ;;  %v493_v30 = vld [vmem:[#allocation2 + $0x940] sm:$0xff]  ;;  %v534_v21 = vld [vmem:[#allocation2 + $0xa88] sm:$0xff] }
 0x14a   :  { %v538_v23 = vld [vmem:[#allocation2 + $0xaa8] sm:$0xff] }
 0x14b   :  { %2221 = vmatpush1.bf16.msra.mxu0 %v2220_v39  ;;  %v3346_v39 = vld [vmem:[%s3417_s0 + $0x8] sm:$0x3f] }
 0x14c   :  { %2417 = vmatpush1.bf16.msra.mxu1 %v2416_v40  ;;  %2223 = vmatprep.subr.bf16.mxu0 %v2222_v41  ;;  %v2436_v40 = vpack.c.bf16 %v459_v33, %v455_v31  ;;  %v2242_v41 = vpack.c.bf16 %v466_v35, %v462_v34  ;;  %v497_v31 = vld [vmem:[#allocation2 + $0x960] sm:$0xff]  ;;  %v499_v34 = vld [vmem:[#allocation2 + $0x970] sm:$0xff]  ;;  %v502_v35 = vld [vmem:[#allocation2 + $0x988] sm:$0xff] }
 0x14d   :  { %2419 = vmatprep.subr.bf16.mxu1 %v2418_v45  ;;  %v3350_v45 = vrot.slane %v3346_v39, %v3321_v11 }
 0x14f   :  { %2225 = vmatpush1.bf16.msra.mxu0 %v2224_v51  ;;  %v476_v51 = vld [vmem:[#allocation2 + $0x8b8] sm:$0xff] }
 0x150   :  { %2421 = vmatpush1.bf16.msra.mxu1 %v2420_v52  ;;  %2227 = vmatprep.subr.bf16.mxu0 %v2226_v53  ;;  %v645_v52 = vcombine.high %v3350_v45, %v3350_v45  ;;  %v2244_v53 = vpack.c.bf16 %v465_v43, %v461_v42  ;;  %v2442_v58 = vpack.c.bf16 %v476_v51, %v472_v50  ;;  %v501_v43 = vld [vmem:[#allocation2 + $0x980] sm:$0xff]  ;;  %v514_v50 = vld [vmem:[#allocation2 + $0x9e8] sm:$0xff]  ;;  %v512_v51 = vld [vmem:[#allocation2 + $0x9d8] sm:$0xff] }
 0x151   :  { %2423 = vmatprep.subr.bf16.mxu1 %v2422_v56  ;;  %v473_v56 = vld [vmem:[#allocation2 + $0x8a0] sm:$0xff]  ;;  %v2262_v42 = vpack.c.bf16 %v506_v36, %v502_v35  ;;  %v542_v35 = vld [vmem:[#allocation2 + $0xac8] sm:$0xff] }
 0x152   :  { %v546_v36 = vld [vmem:[#allocation2 + $0xae8] sm:$0xff] }
 0x153   :  { %2229 = vmatpush1.bf16.msra.mxu0 %v2228_v63  ;;  %v480_v63 = vld [vmem:[#allocation2 + $0x8d8] sm:$0xff] }
 0x154   :  { %2425 = vmatpush1.bf16.msra.mxu1 %v2424_v0  ;;  %2231 = vmatprep.subr.bf16.mxu0 %v2230_v1  ;;  %v484_v0 = vld [vmem:[#allocation2 + $0x8f8] sm:$0xff]  ;;  %v2248_v1 = vpack.c.bf16 %v473_v56, %v469_v55  ;;  %v509_v55 = vld [vmem:[#allocation2 + $0x9c0] sm:$0xff] }
 0x155   :  { %2427 = vmatprep.subr.bf16.mxu1 %v2426_v5  ;;  %v479_v5 = vld [vmem:[#allocation2 + $0x8d0] sm:$0xff]  ;;  %v2446_v6 = vpack.c.bf16 %v484_v0, %v480_v63  ;;  %v513_v56 = vld [vmem:[#allocation2 + $0x9e0] sm:$0xff]  ;;  %v520_v63 = vld [vmem:[#allocation2 + $0xa18] sm:$0xff] }
 0x156   :  { %v524_v0 = vld [vmem:[#allocation2 + $0xa38] sm:$0xff] }
 0x157   :  { %2233 = vmatpush1.bf16.msra.mxu0 %v2232_v12  ;;  %v492_v12 = vld [vmem:[#allocation2 + $0x938] sm:$0xff] }
 0x158   :  { %2429 = vmatpush1.bf16.msra.mxu1 %v2428_v13  ;;  %2235 = vmatprep.subr.bf16.mxu0 %v2234_v14  ;;  %v2252_v13 = vpack.c.bf16 %v481_v4, %v477_v3  ;;  %v2448_v14 = vpack.c.bf16 %v483_v7, %v479_v5  ;;  %v2450_v19 = vpack.c.bf16 %v492_v12, %v488_v10  ;;  %v517_v3 = vld [vmem:[#allocation2 + $0xa00] sm:$0xff]  ;;  %v519_v5 = vld [vmem:[#allocation2 + $0xa10] sm:$0xff]  ;;  %v528_v10 = vld [vmem:[#allocation2 + $0xa58] sm:$0xff] }
 0x159   :  { %2431 = vmatprep.subr.bf16.mxu1 %v2430_v18  ;;  %v487_v18 = vld [vmem:[#allocation2 + $0x910] sm:$0xff]  ;;  %v521_v4 = vld [vmem:[#allocation2 + $0xa20] sm:$0xff]  ;;  %v532_v12 = vld [vmem:[#allocation2 + $0xa78] sm:$0xff] }
 0x15a   :  { %v523_v7 = vld [vmem:[#allocation2 + $0xa30] sm:$0xff] }
 0x15b   :  { %2237 = vmatpush1.bf16.msra.mxu0 %v2236_v26  ;;  %v500_v26 = vld [vmem:[#allocation2 + $0x978] sm:$0xff] }
 0x15c   :  { %2433 = vmatpush1.bf16.msra.mxu1 %v2432_v27  ;;  %2239 = vmatprep.subr.bf16.mxu0 %v2238_v28  ;;  %v2256_v27 = vpack.c.bf16 %v489_v17, %v485_v16  ;;  %v2452_v28 = vpack.c.bf16 %v491_v20, %v487_v18  ;;  %v2454_v33 = vpack.c.bf16 %v500_v26, %v496_v24  ;;  %v525_v16 = vld [vmem:[#allocation2 + $0xa40] sm:$0xff]  ;;  %v527_v18 = vld [vmem:[#allocation2 + $0xa50] sm:$0xff]  ;;  %v536_v24 = vld [vmem:[#allocation2 + $0xa98] sm:$0xff] }
 0x15d   :  { %2435 = vmatprep.subr.bf16.mxu1 %v2434_v32  ;;  %v495_v32 = vld [vmem:[#allocation2 + $0x950] sm:$0xff]  ;;  %v529_v17 = vld [vmem:[#allocation2 + $0xa60] sm:$0xff]  ;;  %v540_v26 = vld [vmem:[#allocation2 + $0xab8] sm:$0xff] }
 0x15e   :  { %791 = vmatmul.mubr.f32.vlgmr.msra.gmra.mrb[0].mxu0 %v3337_v22  ;;  %v531_v20 = vld [vmem:[#allocation2 + $0xa70] sm:$0xff] }
 0x15f   :  { %2241 = vmatpush1.bf16.msra.mxu0 %v2240_v38  ;;  %1075 = vmatmul.mubr.f32.vlgmr.msra.gmra.mrb[0].mxu1 %v3337_v22  ;;  %v2444_v22 = vpack.c.bf16 %v475_v59, %v471_v57  ;;  %v508_v38 = vld [vmem:[#allocation2 + $0x9b8] sm:$0xff]  ;;  %v511_v57 = vld [vmem:[#allocation2 + $0x9d0] sm:$0xff] }
 0x160   :  { %2437 = vmatpush1.bf16.msra.mxu1 %v2436_v40  ;;  %2243 = vmatprep.subr.bf16.mxu0 %v2242_v41  ;;  %v2260_v40 = vpack.c.bf16 %v497_v31, %v493_v30  ;;  %v2456_v41 = vpack.c.bf16 %v499_v34, %v495_v32  ;;  %v2458_v47 = vpack.c.bf16 %v508_v38, %v504_v37  ;;  %v515_v59 = vld [vmem:[#allocation2 + $0x9f0] sm:$0xff]  ;;  %v533_v30 = vld [vmem:[#allocation2 + $0xa80] sm:$0xff]  ;;  %v544_v37 = vld [vmem:[#allocation2 + $0xad8] sm:$0xff] }
 0x161   :  { %2439 = vmatprep.subr.bf16.mxu1 %v2438_v46  ;;  %861 = vmatprep.mubr.f32.mxu0 %v645_v52  ;;  %v503_v46 = vld [vmem:[#allocation2 + $0x990] sm:$0xff]  ;;  %v537_v31 = vld [vmem:[#allocation2 + $0xaa0] sm:$0xff]  ;;  %v548_v38 = vld [vmem:[#allocation2 + $0xaf8] sm:$0xff] }
 0x162   :  { %1145 = vmatprep.mubr.f32.mxu1 %v645_v52  ;;  %v516_v52 = vld [vmem:[#allocation2 + $0x9f8] sm:$0xff]  ;;  %v535_v32 = vld [vmem:[#allocation2 + $0xa90] sm:$0xff] }
 0x163   :  { %2245 = vmatpush1.bf16.msra.mxu0 %v2244_v53  ;;  %v2264_v53 = vpack.c.bf16 %v505_v44, %v501_v43  ;;  %v539_v34 = vld [vmem:[#allocation2 + $0xab0] sm:$0xff]  ;;  %v541_v43 = vld [vmem:[#allocation2 + $0xac0] sm:$0xff] }
 0x164   :  { %2441 = vmatpush1.bf16.msra.mxu1 %v2440_v25  ;;  %2247 = vmatprep.subr.bf16.mxu0 %v2246_v54  ;;  %v2460_v25 = vpack.c.bf16 %v507_v48, %v503_v46  ;;  %v2266_v54 = vpack.c.bf16 %v514_v50, %v510_v49  ;;  %v545_v44 = vld [vmem:[#allocation2 + $0xae0] sm:$0xff]  ;;  %v543_v46 = vld [vmem:[#allocation2 + $0xad0] sm:$0xff]  ;;  %v550_v49 = vld [vmem:[#allocation2 + $0xb08] sm:$0xff] }
 0x165   :  { %2443 = vmatprep.subr.bf16.mxu1 %v2442_v58  ;;  %v2462_v58 = vpack.c.bf16 %v516_v52, %v512_v51  ;;  %v547_v48 = vld [vmem:[#allocation2 + $0xaf0] sm:$0xff]  ;;  %v554_v50 = vld [vmem:[#allocation2 + $0xb28] sm:$0xff]  ;;  %v552_v51 = vld [vmem:[#allocation2 + $0xb18] sm:$0xff] }
 0x166   :  { %v556_v52 = vld [vmem:[#allocation2 + $0xb38] sm:$0xff] }
 0x167   :  { %2249 = vmatpush1.bf16.msra.mxu0 %v2248_v1  ;;  %v2268_v1 = vpack.c.bf16 %v513_v56, %v509_v55  ;;  %v549_v55 = vld [vmem:[#allocation2 + $0xb00] sm:$0xff] }
 0x168   :  { %2445 = vmatpush1.bf16.msra.mxu1 %v2444_v22  ;;  %2251 = vmatprep.subr.bf16.mxu0 %v2250_v2  ;;  %v2464_v22 = vpack.c.bf16 %v515_v59, %v511_v57  ;;  %v2270_v2 = vpack.c.bf16 %v522_v62, %v518_v60  ;;  %v553_v56 = vld [vmem:[#allocation2 + $0xb20] sm:$0xff]  ;;  %v551_v57 = vld [vmem:[#allocation2 + $0xb10] sm:$0xff]  ;;  %v558_v60 = vld [vmem:[#allocation2 + $0xb48] sm:$0xff] }
 0x169   :  { %2447 = vmatprep.subr.bf16.mxu1 %v2446_v6  ;;  %v2466_v6 = vpack.c.bf16 %v524_v0, %v520_v63  ;;  %v555_v59 = vld [vmem:[#allocation2 + $0xb30] sm:$0xff]  ;;  %v562_v62 = vld [vmem:[#allocation2 + $0xb68] sm:$0xff]  ;;  %v560_v63 = vld [vmem:[#allocation2 + $0xb58] sm:$0xff] }
 0x16a   :  { %v564_v0 = vld [vmem:[#allocation2 + $0xb78] sm:$0xff] }
 0x16b   :  { %2253 = vmatpush1.bf16.msra.mxu0 %v2252_v13  ;;  %v2272_v13 = vpack.c.bf16 %v521_v4, %v517_v3  ;;  %v557_v3 = vld [vmem:[#allocation2 + $0xb40] sm:$0xff] }
 0x16c   :  { %2449 = vmatpush1.bf16.msra.mxu1 %v2448_v14  ;;  %2255 = vmatprep.subr.bf16.mxu0 %v2254_v15  ;;  %v2468_v14 = vpack.c.bf16 %v523_v7, %v519_v5  ;;  %v2274_v15 = vpack.c.bf16 %v530_v9, %v526_v8  ;;  %v561_v4 = vld [vmem:[#allocation2 + $0xb60] sm:$0xff]  ;;  %v559_v5 = vld [vmem:[#allocation2 + $0xb50] sm:$0xff]  ;;  %v566_v8 = vld [vmem:[#allocation2 + $0xb88] sm:$0xff] }
 0x16d   :  { %2451 = vmatprep.subr.bf16.mxu1 %v2450_v19  ;;  %v2470_v19 = vpack.c.bf16 %v532_v12, %v528_v10  ;;  %v563_v7 = vld [vmem:[#allocation2 + $0xb70] sm:$0xff]  ;;  %v570_v9 = vld [vmem:[#allocation2 + $0xba8] sm:$0xff]  ;;  %v568_v10 = vld [vmem:[#allocation2 + $0xb98] sm:$0xff] }
 0x16e   :  { %v572_v12 = vld [vmem:[#allocation2 + $0xbb8] sm:$0xff] }
 0x16f   :  { %2257 = vmatpush1.bf16.msra.mxu0 %v2256_v27  ;;  %v2276_v27 = vpack.c.bf16 %v529_v17, %v525_v16  ;;  %v565_v16 = vld [vmem:[#allocation2 + $0xb80] sm:$0xff] }
 0x170   :  { %2453 = vmatpush1.bf16.msra.mxu1 %v2452_v28  ;;  %2259 = vmatprep.subr.bf16.mxu0 %v2258_v29  ;;  %v2472_v28 = vpack.c.bf16 %v531_v20, %v527_v18  ;;  %v2278_v29 = vpack.c.bf16 %v538_v23, %v534_v21  ;;  %v569_v17 = vld [vmem:[#allocation2 + $0xba0] sm:$0xff]  ;;  %v567_v18 = vld [vmem:[#allocation2 + $0xb90] sm:$0xff]  ;;  %v574_v21 = vld [vmem:[#allocation2 + $0xbc8] sm:$0xff] }
 0x171   :  { %2455 = vmatprep.subr.bf16.mxu1 %v2454_v33  ;;  %v2474_v33 = vpack.c.bf16 %v540_v26, %v536_v24  ;;  %v571_v20 = vld [vmem:[#allocation2 + $0xbb0] sm:$0xff]  ;;  %v578_v23 = vld [vmem:[#allocation2 + $0xbe8] sm:$0xff]  ;;  %v576_v24 = vld [vmem:[#allocation2 + $0xbd8] sm:$0xff] }
 0x172   :  { %v580_v26 = vld [vmem:[#allocation2 + $0xbf8] sm:$0xff] }
 0x173   :  { %2261 = vmatpush1.bf16.msra.mxu0 %v2260_v40  ;;  %v2280_v40 = vpack.c.bf16 %v537_v31, %v533_v30  ;;  %v573_v30 = vld [vmem:[#allocation2 + $0xbc0] sm:$0xff] }
 0x174   :  { %2457 = vmatpush1.bf16.msra.mxu1 %v2456_v41  ;;  %2263 = vmatprep.subr.bf16.mxu0 %v2262_v42  ;;  %v2476_v41 = vpack.c.bf16 %v539_v34, %v535_v32  ;;  %v2282_v42 = vpack.c.bf16 %v546_v36, %v542_v35  ;;  %v577_v31 = vld [vmem:[#allocation2 + $0xbe0] sm:$0xff]  ;;  %v575_v32 = vld [vmem:[#allocation2 + $0xbd0] sm:$0xff]  ;;  %v582_v35 = vld [vmem:[#allocation2 + $0xc08] sm:$0xff] }
 0x175   :  { %2459 = vmatprep.subr.bf16.mxu1 %v2458_v47  ;;  %v2478_v47 = vpack.c.bf16 %v548_v38, %v544_v37  ;;  %v579_v34 = vld [vmem:[#allocation2 + $0xbf0] sm:$0xff]  ;;  %v586_v36 = vld [vmem:[#allocation2 + $0xc28] sm:$0xff]  ;;  %v584_v37 = vld [vmem:[#allocation2 + $0xc18] sm:$0xff] }
 0x176   :  { %v588_v38 = vld [vmem:[#allocation2 + $0xc38] sm:$0xff] }
 0x177   :  { %2265 = vmatpush1.bf16.msra.mxu0 %v2264_v53  ;;  %v2284_v53 = vpack.c.bf16 %v545_v44, %v541_v43  ;;  %v581_v43 = vld [vmem:[#allocation2 + $0xc00] sm:$0xff] }
 0x178   :  { %2461 = vmatpush1.bf16.msra.mxu1 %v2460_v25  ;;  %2267 = vmatprep.subr.bf16.mxu0 %v2266_v54  ;;  %v2480_v25 = vpack.c.bf16 %v547_v48, %v543_v46  ;;  %v2286_v54 = vpack.c.bf16 %v554_v50, %v550_v49  ;;  %v585_v44 = vld [vmem:[#allocation2 + $0xc20] sm:$0xff]  ;;  %v2498_v46 = vpack.c.bf16 %v588_v38, %v584_v37  ;;  %v587_v48 = vld [vmem:[#allocation2 + $0xc30] sm:$0xff] }
 0x179   :  { %2463 = vmatprep.subr.bf16.mxu1 %v2462_v58  ;;  %v2482_v58 = vpack.c.bf16 %v556_v52, %v552_v51  ;;  %v1228_v49 = vld [vmem:[#allocation6 + $0x8] sm:$0xff]  ;;  %v1230_v50 = vld [vmem:[#allocation6 + $0x18] sm:$0xff]  ;;  %v2304_v51 = vpack.c.bf16 %v585_v44, %v581_v43 }
 0x17a   :  { %v1262_v37 = vld [vmem:[#allocation6 + $0x118] sm:$0xff]  ;;  %v1264_v43 = vld [vmem:[#allocation6 + $0x128] sm:$0xff] }
 0x17b   :  { %2269 = vmatpush1.bf16.msra.mxu0 %v2268_v1  ;;  %v2288_v1 = vpack.c.bf16 %v553_v56, %v549_v55  ;;  %v1227_v55 = vld [vmem:[#allocation6] sm:$0xff]  ;;  %v1229_v56 = vld [vmem:[#allocation6 + $0x10] sm:$0xff]  ;;  %v1266_v44 = vld [vmem:[#allocation6 + $0x138] sm:$0xff] }
 0x17c   :  { %2465 = vmatpush1.bf16.msra.mxu1 %v2464_v22  ;;  %2271 = vmatprep.subr.bf16.mxu0 %v2270_v2  ;;  %v2484_v22 = vpack.c.bf16 %v555_v59, %v551_v57  ;;  %v2290_v2 = vpack.c.bf16 %v562_v62, %v558_v60  ;;  %v1232_v57 = vld [vmem:[#allocation6 + $0x28] sm:$0xff]  ;;  %v1231_v62 = vld [vmem:[#allocation6 + $0x20] sm:$0xff] }
 0x17d   :  { %2467 = vmatprep.subr.bf16.mxu1 %v2466_v6  ;;  %v2486_v6 = vpack.c.bf16 %v564_v0, %v560_v63  ;;  %v1233_v63 = vld [vmem:[#allocation6 + $0x30] sm:$0xff]  ;;  %v1238_v0 = vld [vmem:[#allocation6 + $0x58] sm:$0xff] }
 0x17f   :  { %2273 = vmatpush1.bf16.msra.mxu0 %v2272_v13  ;;  %v2292_v13 = vpack.c.bf16 %v561_v4, %v557_v3  ;;  %v1237_v3 = vld [vmem:[#allocation6 + $0x50] sm:$0xff]  ;;  %v1240_v4 = vld [vmem:[#allocation6 + $0x68] sm:$0xff] }
 0x180   :  { %2469 = vmatpush1.bf16.msra.mxu1 %v2468_v14  ;;  %2275 = vmatprep.subr.bf16.mxu0 %v2274_v15  ;;  %v2488_v14 = vpack.c.bf16 %v563_v7, %v559_v5  ;;  %v2294_v15 = vpack.c.bf16 %v570_v9, %v566_v8  ;;  %v1242_v5 = vld [vmem:[#allocation6 + $0x78] sm:$0xff]  ;;  %v1239_v7 = vld [vmem:[#allocation6 + $0x60] sm:$0xff]  ;;  %v1241_v8 = vld [vmem:[#allocation6 + $0x70] sm:$0xff] }
 0x181   :  { %2471 = vmatprep.subr.bf16.mxu1 %v2470_v19  ;;  %v2490_v19 = vpack.c.bf16 %v572_v12, %v568_v10  ;;  %v1244_v9 = vld [vmem:[#allocation6 + $0x88] sm:$0xff]  ;;  %v1246_v10 = vld [vmem:[#allocation6 + $0x98] sm:$0xff]  ;;  %v2516_v12 = vpack.c.bf16 %v1241_v8, %v1239_v7 }
 0x182   :  { %v1284_v7 = vld [vmem:[#allocation6 + $0x1c8] sm:$0xff]  ;;  %v1286_v8 = vld [vmem:[#allocation6 + $0x1d8] sm:$0xff] }
 0x183   :  { %2277 = vmatpush1.bf16.msra.mxu0 %v2276_v27  ;;  %v2296_v27 = vpack.c.bf16 %v569_v17, %v565_v16  ;;  %v1248_v16 = vld [vmem:[#allocation6 + $0xa8] sm:$0xff]  ;;  %v1250_v17 = vld [vmem:[#allocation6 + $0xb8] sm:$0xff] }
 0x184   :  { %2473 = vmatpush1.bf16.msra.mxu1 %v2472_v28  ;;  %2279 = vmatprep.subr.bf16.mxu0 %v2278_v29  ;;  %v2492_v28 = vpack.c.bf16 %v571_v20, %v567_v18  ;;  %v2298_v29 = vpack.c.bf16 %v578_v23, %v574_v21  ;;  %v1247_v20 = vld [vmem:[#allocation6 + $0xa0] sm:$0xff]  ;;  %v1249_v21 = vld [vmem:[#allocation6 + $0xb0] sm:$0xff]  ;;  %v1252_v23 = vld [vmem:[#allocation6 + $0xc8] sm:$0xff] }
 0x185   :  { %2475 = vmatprep.subr.bf16.mxu1 %v2474_v33  ;;  %v2494_v33 = vpack.c.bf16 %v580_v26, %v576_v24  ;;  %v1254_v24 = vld [vmem:[#allocation6 + $0xd8] sm:$0xff]  ;;  %v2524_v26 = vpack.c.bf16 %v1249_v21, %v1247_v20  ;;  %v1292_v21 = vld [vmem:[#allocation6 + $0x208] sm:$0xff] }
 0x187   :  { %2281 = vmatpush1.bf16.msra.mxu0 %v2280_v40  ;;  %v2300_v40 = vpack.c.bf16 %v577_v31, %v573_v30  ;;  %v1256_v30 = vld [vmem:[#allocation6 + $0xe8] sm:$0xff]  ;;  %v1258_v31 = vld [vmem:[#allocation6 + $0xf8] sm:$0xff] }
 0x188   :  { %2477 = vmatpush1.bf16.msra.mxu1 %v2476_v41  ;;  %2283 = vmatprep.subr.bf16.mxu0 %v2282_v42  ;;  %v2496_v41 = vpack.c.bf16 %v579_v34, %v575_v32  ;;  %v2302_v42 = vpack.c.bf16 %v586_v36, %v582_v35  ;;  %v1255_v34 = vld [vmem:[#allocation6 + $0xe0] sm:$0xff]  ;;  %v1257_v35 = vld [vmem:[#allocation6 + $0xf0] sm:$0xff]  ;;  %v1260_v36 = vld [vmem:[#allocation6 + $0x108] sm:$0xff] }
 0x189   :  { %2479 = vmatprep.subr.bf16.mxu1 %v2478_v47  ;;  %v583_v47 = vld [vmem:[#allocation2 + $0xc10] sm:$0xff]  ;;  %v2532_v38 = vpack.c.bf16 %v1257_v35, %v1255_v34 }
 0x18a   :  { %v2500_v52 = vpack.c.bf16 %v587_v48, %v583_v47  ;;  %v2538_v47 = vpack.c.bf16 %v1266_v44, %v1264_v43  ;;  %v1263_v48 = vld [vmem:[#allocation6 + $0x120] sm:$0xff]  ;;  %v1513_v35 = vld [vmem:[#allocation9 + $0x10] sm:$0xff]  ;;  %v1516_v43 = vld [vmem:[#allocation9 + $0x28] sm:$0xff] }
 0x18b   :  { %2285 = vmatpush1.bf16.msra.mxu0 %v2284_v53  ;;  %v2502_v53 = vpack.c.bf16 %v1230_v50, %v1228_v49  ;;  %v1265_v49 = vld [vmem:[#allocation6 + $0x130] sm:$0xff]  ;;  %v1268_v50 = vld [vmem:[#allocation6 + $0x148] sm:$0xff] }
 0x18c   :  { %2481 = vmatpush1.bf16.msra.mxu1 %v2480_v25  ;;  %2287 = vmatprep.subr.bf16.mxu0 %v2286_v54  ;;  %v630_v25 = vcombine.high %v3346_v39, %v3346_v39  ;;  %v3075_v54 = vmov 0.0   ;;  %v2504_v39 = vpack.c.bf16 %v1229_v56, %v1227_v55  ;;  %v1269_v55 = vld [vmem:[#allocation6 + $0x150] sm:$0xff]  ;;  %v1272_v56 = vld [vmem:[#allocation6 + $0x168] sm:$0xff] }
 0x18d   :  { %2483 = vmatprep.subr.bf16.mxu1 %v2482_v58  ;;  %v1234_v58 = vld [vmem:[#allocation6 + $0x38] sm:$0xff] }
 0x18e   :  { %v644_v59 = vrot.slane %v630_v25, %v3321_v11  ;;  %v2506_v60 = vpack.c.bf16 %v1234_v58, %v1232_v57  ;;  %v2514_v11 = vpack.c.bf16 %v1242_v5, %v1240_v4  ;;  %v1267_v25 = vld [vmem:[#allocation6 + $0x140] sm:$0xff]  ;;  %v1274_v57 = vld [vmem:[#allocation6 + $0x178] sm:$0xff] }
 0x18f   :  { %2289 = vmatpush1.bf16.msra.mxu0 %v2288_v1  ;;  %v2508_v1 = vpack.c.bf16 %v1233_v63, %v1231_v62  ;;  %v2544_v58 = vpack.c.bf16 %v1269_v55, %v1267_v25  ;;  %v1276_v62 = vld [vmem:[#allocation6 + $0x188] sm:$0xff]  ;;  %v1278_v63 = vld [vmem:[#allocation6 + $0x198] sm:$0xff] }
 0x190   :  { %2485 = vmatpush1.bf16.msra.mxu1 %v2484_v22  ;;  %2291 = vmatprep.subr.bf16.mxu0 %v2290_v2  ;;  %v1235_v2 = vld [vmem:[#allocation6 + $0x40] sm:$0xff]  ;;  %v1533_v44 = vld [vmem:[#allocation9 + $0xb0] sm:$0xff] }
 0x191   :  { %2487 = vmatprep.subr.bf16.mxu1 %v2486_v6  ;;  %v2512_v6 = vpack.c.bf16 %v1237_v3, %v1235_v2  ;;  %v1280_v2 = vld [vmem:[#allocation6 + $0x1a8] sm:$0xff]  ;;  %v1282_v3 = vld [vmem:[#allocation6 + $0x1b8] sm:$0xff] }
 0x192   :  { %v2554_v5 = vpack.c.bf16 %v1282_v3, %v1280_v2  ;;  %v1519_v55 = vld [vmem:[#allocation9 + $0x40] sm:$0xff]  ;;  %v3364_v2 = vld [vmem:[#allocation4] sm:$0xf]  ;;  %v597_v3 = vsub.s32 1, %v3318_v61 }
 0x193   :  { %2293 = vmatpush1.bf16.msra.mxu0 %v2292_v13  ;;  %v2518_v13 = vpack.c.bf16 %v1246_v10, %v1244_v9  ;;  %v2558_v10 = vpack.c.bf16 %v1286_v8, %v1284_v7 }
 0x194   :  { %2489 = vmatpush1.bf16.msra.mxu1 %v2488_v14  ;;  %2295 = vmatprep.subr.bf16.mxu0 %v2294_v15  ;;  %v1243_v14 = vld [vmem:[#allocation6 + $0x80] sm:$0xff]  ;;  %v1245_v15 = vld [vmem:[#allocation6 + $0x90] sm:$0xff] }
 0x195   :  { %2491 = vmatprep.subr.bf16.mxu1 %v2490_v19  ;;  %v2520_v18 = vpack.c.bf16 %v1245_v15, %v1243_v14  ;;  %v2522_v19 = vpack.c.bf16 %v1250_v17, %v1248_v16  ;;  %v1288_v15 = vld [vmem:[#allocation6 + $0x1e8] sm:$0xff]  ;;  %v1290_v16 = vld [vmem:[#allocation6 + $0x1f8] sm:$0xff] }
 0x196   :  { %v2562_v17 = vpack.c.bf16 %v1290_v16, %v1288_v15  ;;  %v1296_v16 = vld [vmem:[#allocation6 + $0x228] sm:$0xff] }
 0x197   :  { %2297 = vmatpush1.bf16.msra.mxu0 %v2296_v27  ;;  %v2526_v27 = vpack.c.bf16 %v1254_v24, %v1252_v23  ;;  %v1294_v23 = vld [vmem:[#allocation6 + $0x218] sm:$0xff] }
 0x198   :  { %2493 = vmatpush1.bf16.msra.mxu1 %v2492_v28  ;;  %2299 = vmatprep.subr.bf16.mxu0 %v2298_v29  ;;  %v1251_v28 = vld [vmem:[#allocation6 + $0xc0] sm:$0xff]  ;;  %v1253_v29 = vld [vmem:[#allocation6 + $0xd0] sm:$0xff]  ;;  %v2566_v24 = vpack.c.bf16 %v1294_v23, %v1292_v21 }
 0x199   :  { %2495 = vmatprep.subr.bf16.mxu1 %v2494_v33  ;;  %v2528_v32 = vpack.c.bf16 %v1253_v29, %v1251_v28  ;;  %v2530_v33 = vpack.c.bf16 %v1258_v31, %v1256_v30  ;;  %v1511_v28 = vld [vmem:[#allocation9] sm:$0xff]  ;;  %v1512_v30 = vld [vmem:[#allocation9 + $0x8] sm:$0xff]  ;;  %v1529_v31 = vld [vmem:[#allocation9 + $0x90] sm:$0xff] }
 0x19b   :  { %2301 = vmatpush1.bf16.msra.mxu0 %v2300_v40  ;;  %v2534_v40 = vpack.c.bf16 %v1262_v37, %v1260_v36  ;;  %v1514_v36 = vld [vmem:[#allocation9 + $0x18] sm:$0xff]  ;;  %v1531_v37 = vld [vmem:[#allocation9 + $0xa0] sm:$0xff] }
 0x19c   :  { %2497 = vmatpush1.bf16.msra.mxu1 %v2496_v41  ;;  %2303 = vmatprep.subr.bf16.mxu0 %v2302_v42  ;;  %v1259_v41 = vld [vmem:[#allocation6 + $0x100] sm:$0xff]  ;;  %v1261_v42 = vld [vmem:[#allocation6 + $0x110] sm:$0xff] }
 0x19d   :  { %2499 = vmatprep.subr.bf16.mxu1 %v2498_v46  ;;  %v2536_v46 = vpack.c.bf16 %v1261_v42, %v1259_v41  ;;  %v1515_v42 = vld [vmem:[#allocation9 + $0x20] sm:$0xff] }
 0x19e   :  { %862 = vmatmul.mubr.f32.vlgmr.msra.gmra.mrb[0].mxu0 %v3350_v45 }
 0x19f   :  { %1146 = vmatmul.mubr.f32.vlgmr.msra.gmra.mrb[0].mxu1 %v3350_v45  ;;  %2305 = vmatpush1.bf16.msra.mxu0 %v2304_v51  ;;  %v1236_v45 = vld [vmem:[#allocation6 + $0x48] sm:$0xff]  ;;  %v1270_v51 = vld [vmem:[#allocation6 + $0x158] sm:$0xff] }
 0x1a0   :  { %2501 = vmatpush1.bf16.msra.mxu1 %v2500_v52  ;;  %932 = vmatprep.mubr.f32.mxu0 %v3075_v54  ;;  %v2510_v22 = vpack.c.bf16 %v1238_v0, %v1236_v45  ;;  %v2540_v52 = vpack.c.bf16 %v1265_v49, %v1263_v48  ;;  %v2550_v0 = vpack.c.bf16 %v1278_v63, %v1276_v62  ;;  %v1517_v49 = vld [vmem:[#allocation9 + $0x30] sm:$0xff]  ;;  %v1522_v62 = vld [vmem:[#allocation9 + $0x58] sm:$0xff]  ;;  %v1539_v63 = vld [vmem:[#allocation9 + $0xe0] sm:$0xff] }
 0x1a1   :  { %1216 = vmatprep.mubr.f32.mxu1 %v3075_v54  ;;  %2503 = vmatprep.subr.bf16.mxu0 %v2502_v53  ;;  %v2542_v53 = vpack.c.bf16 %v1270_v51, %v1268_v50  ;;  %v1518_v50 = vld [vmem:[#allocation9 + $0x38] sm:$0xff]  ;;  %v1535_v51 = vld [vmem:[#allocation9 + $0xc0] sm:$0xff] }
 0x1a6   :  { %1913 = vmatmul.mubr.msk.f32.vlgmr.msra.gmra.mrb[0].mxu0 %vm652_vm0, %v644_v59 }
 0x1a7   :  { %1914 = vmatmul.mubr.msk.f32.vlgmr.msra.gmra.mrb[0].mxu1 %vm652_vm0, %v644_v59  ;;  %2505 = vmatpush1.bf16.msra.mxu0 %v2504_v39  ;;  %v2546_v59 = vpack.c.bf16 %v1274_v57, %v1272_v56  ;;  %v1271_v39 = vld [vmem:[#allocation6 + $0x160] sm:$0xff]  ;;  %v1520_v56 = vld [vmem:[#allocation9 + $0x48] sm:$0xff]  ;;  %v1537_v57 = vld [vmem:[#allocation9 + $0xd0] sm:$0xff] }
 0x1a8   :  { %2507 = vmatprep.subr.bf16.mxu0 %v2506_v60  ;;  %v1273_v60 = vld [vmem:[#allocation6 + $0x170] sm:$0xff] }
 0x1a9   :  { %v2548_v45 = vpack.c.bf16 %v1273_v60, %v1271_v39  ;;  %v1521_v60 = vld [vmem:[#allocation9 + $0x50] sm:$0xff] }
 0x1ab   :  { %2509 = vmatpush1.bf16.msra.mxu0 %v2508_v1  ;;  %v1275_v1 = vld [vmem:[#allocation6 + $0x180] sm:$0xff] }
 0x1ac   :  { %2511 = vmatprep.subr.bf16.mxu0 %v2510_v22  ;;  %v1277_v22 = vld [vmem:[#allocation6 + $0x190] sm:$0xff] }
 0x1ad   :  { %v2552_v4 = vpack.c.bf16 %v1277_v22, %v1275_v1  ;;  %v593_v22 = vsub.s32 0, %v3318_v61 }
 0x1af   :  { %2513 = vmatpush1.bf16.msra.mxu0 %v2512_v6  ;;  %v1279_v6 = vld [vmem:[#allocation6 + $0x1a0] sm:$0xff] }
 0x1b0   :  { %2515 = vmatprep.subr.bf16.mxu0 %v2514_v11  ;;  %v1281_v11 = vld [vmem:[#allocation6 + $0x1b0] sm:$0xff] }
 0x1b1   :  { %v2556_v9 = vpack.c.bf16 %v1281_v11, %v1279_v6  ;;  %v598_v6 = vrot.slane %v3364_v2, %v597_v3 }
 0x1b3   :  { %2517 = vmatpush1.bf16.msra.mxu0 %v2516_v12  ;;  %v1283_v12 = vld [vmem:[#allocation6 + $0x1c0] sm:$0xff] }
 0x1b4   :  { %2519 = vmatprep.subr.bf16.mxu0 %v2518_v13  ;;  %v1285_v13 = vld [vmem:[#allocation6 + $0x1d0] sm:$0xff] }
 0x1b5   :  { %v2560_v14 = vpack.c.bf16 %v1285_v13, %v1283_v12  ;;  %v1291_v12 = vld [vmem:[#allocation6 + $0x200] sm:$0xff]  ;;  %v1293_v13 = vld [vmem:[#allocation6 + $0x210] sm:$0xff] }
 0x1b7   :  { %2521 = vmatpush1.bf16.msra.mxu0 %v2520_v18  ;;  %v1287_v18 = vld [vmem:[#allocation6 + $0x1e0] sm:$0xff] }
 0x1b8   :  { %2523 = vmatprep.subr.bf16.mxu0 %v2522_v19  ;;  %v1289_v19 = vld [vmem:[#allocation6 + $0x1f0] sm:$0xff] }
 0x1b9   :  { %v2564_v20 = vpack.c.bf16 %v1289_v19, %v1287_v18 }
 0x1bb   :  { %2525 = vmatpush1.bf16.msra.mxu0 %v2524_v26  ;;  %v1527_v26 = vld [vmem:[#allocation9 + $0x80] sm:$0xff] }
 0x1bc   :  { %2527 = vmatprep.subr.bf16.mxu0 %v2526_v27  ;;  %v1528_v27 = vld [vmem:[#allocation9 + $0x88] sm:$0xff] }
 0x1bd   :  { %v2630_v29 = vpack.c.bf16 %v1528_v27, %v1527_v26  ;;  %v1297_v26 = vld [vmem:[#allocation6 + $0x230] sm:$0xff] }
 0x1bf   :  { %2529 = vmatpush1.bf16.msra.mxu0 %v2528_v32  ;;  %v1530_v32 = vld [vmem:[#allocation9 + $0x98] sm:$0xff]  ;;  %2631 = vmatprep.subr.bf16.mxu1 %v2630_v29 }
 0x1c0   :  { %2531 = vmatprep.subr.bf16.mxu0 %v2530_v33  ;;  %v2632_v33 = vpack.c.bf16 %v1512_v30, %v1511_v28  ;;  %v2634_v34 = vpack.c.bf16 %v1530_v32, %v1529_v31  ;;  %v1300_v28 = vld [vmem:[#allocation6 + $0x248] sm:$0xff]  ;;  %v1302_v29 = vld [vmem:[#allocation6 + $0x258] sm:$0xff]  ;;  %v1299_v32 = vld [vmem:[#allocation6 + $0x240] sm:$0xff] }
 0x1c1   :  { %v2574_v31 = vpack.c.bf16 %v1302_v29, %v1300_v28  ;;  %v1335_v28 = vld [vmem:[#allocation6 + $0x360] sm:$0xff]  ;;  %v1337_v29 = vld [vmem:[#allocation6 + $0x370] sm:$0xff] }
 0x1c2   :  { %2633 = vmatpush3.bf16.msra.mxu1 %v2632_v33  ;;  %v1301_v33 = vld [vmem:[#allocation6 + $0x250] sm:$0xff] }
 0x1c3   :  { %2533 = vmatpush1.bf16.msra.mxu0 %v2532_v38  ;;  %v1532_v38 = vld [vmem:[#allocation9 + $0xa8] sm:$0xff]  ;;  %2635 = vmatprep.subr.bf16.mxu1 %v2634_v34 }
 0x1c4   :  { %2535 = vmatprep.subr.bf16.mxu0 %v2534_v40  ;;  %v2636_v40 = vpack.c.bf16 %v1514_v36, %v1513_v35  ;;  %v2638_v41 = vpack.c.bf16 %v1532_v38, %v1531_v37  ;;  %v1304_v34 = vld [vmem:[#allocation6 + $0x268] sm:$0xff]  ;;  %v1306_v35 = vld [vmem:[#allocation6 + $0x278] sm:$0xff]  ;;  %v2576_v36 = vpack.c.bf16 %v1301_v33, %v1299_v32  ;;  %v1303_v38 = vld [vmem:[#allocation6 + $0x260] sm:$0xff]  ;;  %v2612_v32 = vpack.c.bf16 %v1337_v29, %v1335_v28 }
 0x1c5   :  { %v2578_v37 = vpack.c.bf16 %v1306_v35, %v1304_v34  ;;  %v1339_v34 = vld [vmem:[#allocation6 + $0x380] sm:$0xff]  ;;  %v1341_v35 = vld [vmem:[#allocation6 + $0x390] sm:$0xff] }
 0x1c6   :  { %2637 = vmatpush3.bf16.msra.mxu1 %v2636_v40  ;;  %v1305_v40 = vld [vmem:[#allocation6 + $0x270] sm:$0xff] }
 0x1c7   :  { %2537 = vmatpush1.bf16.msra.mxu0 %v2536_v46  ;;  %v1534_v46 = vld [vmem:[#allocation9 + $0xb8] sm:$0xff]  ;;  %2639 = vmatprep.subr.bf16.mxu1 %v2638_v41  ;;  %v1308_v41 = vld [vmem:[#allocation6 + $0x288] sm:$0xff] }
 0x1c8   :  { %2539 = vmatprep.subr.bf16.mxu0 %v2538_v47  ;;  %v2640_v47 = vpack.c.bf16 %v1516_v43, %v1515_v42  ;;  %v2642_v48 = vpack.c.bf16 %v1534_v46, %v1533_v44  ;;  %v1310_v42 = vld [vmem:[#allocation6 + $0x298] sm:$0xff]  ;;  %v2580_v43 = vpack.c.bf16 %v1305_v40, %v1303_v38  ;;  %v1307_v46 = vld [vmem:[#allocation6 + $0x280] sm:$0xff]  ;;  %v2616_v38 = vpack.c.bf16 %v1341_v35, %v1339_v34  ;;  %v1630_v28 = vld [vmem:[#allocation12 + $0x48] sm:$0xff] }
 0x1c9   :  { %v2582_v44 = vpack.c.bf16 %v1310_v42, %v1308_v41  ;;  %v1343_v41 = vld [vmem:[#allocation6 + $0x3a0] sm:$0xff]  ;;  %v1345_v42 = vld [vmem:[#allocation6 + $0x3b0] sm:$0xff] }
 0x1ca   :  { %2641 = vmatpush3.bf16.msra.mxu1 %v2640_v47  ;;  %v1309_v47 = vld [vmem:[#allocation6 + $0x290] sm:$0xff] }
 0x1cb   :  { %2541 = vmatpush1.bf16.msra.mxu0 %v2540_v52  ;;  %v1536_v52 = vld [vmem:[#allocation9 + $0xc8] sm:$0xff]  ;;  %2643 = vmatprep.subr.bf16.mxu1 %v2642_v48 }
 0x1cc   :  { %2543 = vmatprep.subr.bf16.mxu0 %v2542_v53  ;;  %v2644_v53 = vpack.c.bf16 %v1518_v50, %v1517_v49  ;;  %v2646_v25 = vpack.c.bf16 %v1536_v52, %v1535_v51  ;;  %v1312_v48 = vld [vmem:[#allocation6 + $0x2a8] sm:$0xff]  ;;  %v1314_v49 = vld [vmem:[#allocation6 + $0x2b8] sm:$0xff]  ;;  %v2584_v50 = vpack.c.bf16 %v1309_v47, %v1307_v46  ;;  %v1311_v52 = vld [vmem:[#allocation6 + $0x2a0] sm:$0xff]  ;;  %v2620_v46 = vpack.c.bf16 %v1345_v42, %v1343_v41 }
 0x1cd   :  { %v2586_v51 = vpack.c.bf16 %v1314_v49, %v1312_v48  ;;  %v601_v47 = vsub.s32 2, %v3318_v61  ;;  %v1347_v49 = vld [vmem:[#allocation6 + $0x3c0] sm:$0xff]  ;;  %v1634_v34 = vld [vmem:[#allocation12 + $0x68] sm:$0xff] }
 0x1ce   :  { %2645 = vmatpush3.bf16.msra.mxu1 %v2644_v53  ;;  %v1313_v53 = vld [vmem:[#allocation6 + $0x2b0] sm:$0xff]  ;;  %v1915_v41 = vld [vmem:[#allocation10] ss:$0 sm:$0xff] }
 0x1cf   :  { %2545 = vmatpush1.bf16.msra.mxu0 %v2544_v58  ;;  %v1538_v58 = vld [vmem:[#allocation9 + $0xd8] sm:$0xff]  ;;  %2647 = vmatprep.subr.bf16.mxu1 %v2646_v25  ;;  %v1316_v25 = vld [vmem:[#allocation6 + $0x2c8] sm:$0xff] }
 0x1d0   :  { %2547 = vmatprep.subr.bf16.mxu0 %v2546_v59  ;;  %v2648_v59 = vpack.c.bf16 %v1520_v56, %v1519_v55  ;;  %v2650_v39 = vpack.c.bf16 %v1538_v58, %v1537_v57  ;;  %v1318_v55 = vld [vmem:[#allocation6 + $0x2d8] sm:$0xff]  ;;  %v2588_v56 = vpack.c.bf16 %v1313_v53, %v1311_v52  ;;  %v1315_v58 = vld [vmem:[#allocation6 + $0x2c0] sm:$0xff] }
 0x1d1   :  { %v2590_v57 = vpack.c.bf16 %v1318_v55, %v1316_v25  ;;  %v1354_v52 = vld [vmem:[#allocation6 + $0x3f8] sm:$0xff]  ;;  %v602_v25 = vrot.slane %v3364_v2, %v601_v47 }
 0x1d2   :  { %2649 = vmatpush3.bf16.msra.mxu1 %v2648_v59  ;;  %v1317_v59 = vld [vmem:[#allocation6 + $0x2d0] sm:$0xff] }
 0x1d3   :  { %2549 = vmatpush1.bf16.msra.mxu0 %v2548_v45  ;;  %v1540_v45 = vld [vmem:[#allocation9 + $0xe8] sm:$0xff]  ;;  %2651 = vmatprep.subr.bf16.mxu1 %v2650_v39 }
 0x1d4   :  { %2551 = vmatprep.subr.bf16.mxu0 %v2550_v0  ;;  %v2652_v0 = vpack.c.bf16 %v1522_v62, %v1521_v60  ;;  %v2654_v1 = vpack.c.bf16 %v1540_v45, %v1539_v63  ;;  %v1320_v39 = vld [vmem:[#allocation6 + $0x2e8] sm:$0xff]  ;;  %v1322_v60 = vld [vmem:[#allocation6 + $0x2f8] sm:$0xff]  ;;  %v2592_v62 = vpack.c.bf16 %v1317_v59, %v1315_v58  ;;  %v1319_v45 = vld [vmem:[#allocation6 + $0x2e0] sm:$0xff] }
 0x1d5   :  { %v2594_v63 = vpack.c.bf16 %v1322_v60, %v1320_v39  ;;  %v1523_v60 = vld [vmem:[#allocation9 + $0x60] sm:$0xff] }
 0x1d6   :  { %2653 = vmatpush3.bf16.msra.mxu1 %v2652_v0  ;;  %v1321_v0 = vld [vmem:[#allocation6 + $0x2f0] sm:$0xff] }
 0x1d7   :  { %2553 = vmatpush1.bf16.msra.mxu0 %v2552_v4  ;;  %2655 = vmatprep.subr.bf16.mxu1 %v2654_v1  ;;  %v605_v4 = vsub.s32 3, %v3318_v61  ;;  %v1324_v1 = vld [vmem:[#allocation6 + $0x308] sm:$0xff] }
 0x1d8   :  { %2555 = vmatprep.subr.bf16.mxu0 %v2554_v5  ;;  %v594_v5 = vrot.slane %v3364_v2, %v593_v22  ;;  %v1626_v61 = vld [vmem:[#allocation12 + $0x28] sm:$0xff] }
 0x1d9   :  { %v606_v11 = vrot.slane %v3364_v2, %v605_v4  ;;  %v1326_v4 = vld [vmem:[#allocation6 + $0x318] sm:$0xff] }
 0x1da   :  { %v1525_v2 = vld [vmem:[#allocation9 + $0x70] sm:$0xff] }
 0x1db   :  { %2557 = vmatpush1.bf16.msra.mxu0 %v2556_v9 }
 0x1dc   :  { %2559 = vmatprep.subr.bf16.mxu0 %v2558_v10 }
 0x1df   :  { %2561 = vmatpush1.bf16.msra.mxu0 %v2560_v14 }
 0x1e0   :  { %2563 = vmatprep.subr.bf16.mxu0 %v2562_v17  ;;  %v1298_v17 = vld [vmem:[#allocation6 + $0x238] sm:$0xff] }
 0x1e1   :  { %v2570_v23 = vpack.c.bf16 %v1298_v17, %v1296_v16  ;;  %v1332_v16 = vld [vmem:[#allocation6 + $0x348] sm:$0xff]  ;;  %v1334_v17 = vld [vmem:[#allocation6 + $0x358] sm:$0xff] }
 0x1e3   :  { %2565 = vmatpush1.bf16.msra.mxu0 %v2564_v20  ;;  %v2568_v20 = vpack.c.bf16 %v1293_v13, %v1291_v12 }
 0x1e4   :  { %2567 = vmatprep.subr.bf16.mxu0 %v2566_v24  ;;  %v1295_v24 = vld [vmem:[#allocation6 + $0x220] sm:$0xff] }
 0x1e5   :  { %v2572_v30 = vpack.c.bf16 %v1297_v26, %v1295_v24  ;;  %v1338_v24 = vld [vmem:[#allocation6 + $0x378] sm:$0xff] }
 0x279   :  { %v934_v7 = vpop.f32.mrb[0].mxu0 }
 0x27a   :  { %v2734_v8 = vadd.f32 %v934_v7, %v594_v5  ;;  %v3375_v9 = vpop.f32.mrb[0].mxu1  ;;  %v936_v10 = vpop.f32.mrb[1].mxu0  ;;  %v2596_v5 = vpack.c.bf16 %v1321_v0, %v1319_v45  ;;  %v1325_v7 = vld [vmem:[#allocation6 + $0x310] sm:$0xff]  ;;  %v1542_v0 = vld [vmem:[#allocation9 + $0xf8] sm:$0xff] }
 0x27b   :  { %v2735_v14 = vadd.f32 %v936_v10, %v598_v6  ;;  %v1220_v15 = vpop.f32.mrb[1].mxu1  ;;  %v2598_v6 = vpack.c.bf16 %v1326_v4, %v1324_v1  ;;  %v1330_v10 = vld [vmem:[#allocation6 + $0x338] sm:$0xff]  ;;  %v2736_v59 = vadd.f32 %v3375_v9, %v602_v25  ;;  %v1355_v9 = vld [vmem:[#allocation7] sm:$0x3]  ;;  %v1720_v25 = vld [vmem:[#allocation15 + $0x28] sm:$0xff] }
 0x27c   :  { %v2737_v18 = vadd.f32 %v1220_v15, %v606_v11  ;;  %v1223_v21 = vmax.f32 %v2734_v8, 0.0  ;;  %v1323_v11 = vld [vmem:[#allocation6 + $0x300] sm:$0xff]  ;;  %v1328_v8 = vld [vmem:[#allocation6 + $0x328] sm:$0xff]  ;;  %v1329_v15 = vld [vmem:[#allocation6 + $0x330] sm:$0xff] }
 0x27d   :  { %v1224_v19 = vmax.f32 %v2735_v14, 0.0  ;;  %v2600_v12 = vpack.c.bf16 %v1325_v7, %v1323_v11  ;;  %v2602_v13 = vpack.c.bf16 %v1330_v10, %v1328_v8  ;;  %v1327_v14 = vld [vmem:[#allocation6 + $0x320] sm:$0xff]  ;;  %v1225_v39 = vmax.f32 %v2736_v59, 0.0  ;;  %v1541_v45 = vld [vmem:[#allocation9 + $0xf0] sm:$0xff] }
 0x27e   :  { %v1226_v27 = vmax.f32 %v2737_v18, 0.0  ;;  %v2604_v18 = vpack.c.bf16 %v1329_v15, %v1327_v14  ;;  %v2658_v1 = vpack.c.bf16 %v1542_v0, %v1541_v45  ;;  %v1526_v4 = vld [vmem:[#allocation9 + $0x78] sm:$0xff]  ;;  %v1360_v11 = vrot.slane %v1355_v9, %v593_v22  ;;  %v1622_v14 = vld [vmem:[#allocation12 + $0x8] sm:$0xff]  ;;  %v1625_v22 = vld [vmem:[#allocation12 + $0x20] sm:$0xff] }
 0x27f   :  { %1431 = vmatprep.mubr.f32.mxu0 %v1224_v19  ;;  %v2606_v19 = vpack.c.bf16 %v1334_v17, %v1332_v16  ;;  %v1364_v7 = vrot.slane %v1355_v9, %v597_v3  ;;  %v2669_v3 = vpack.c.bf16 %v1626_v61, %v1625_v22  ;;  %v1723_v59 = vld [vmem:[#allocation15 + $0x40] sm:$0xff]  ;;  %v1814_v22 = vld [vmem:[#allocation18 + $0x30] sm:$0xff] }
 0x280   :  { %1432 = vmatmul.mubr.f32.vlgmr.msra.gmra.mrb[2].mxu0 %v1223_v21  ;;  %v1333_v21 = vld [vmem:[#allocation6 + $0x350] sm:$0xff]  ;;  %v1727_v0 = vld [vmem:[#allocation15 + $0x60] sm:$0xff] }
 0x281   :  { %2569 = vmatpush1.bf16.msra.mxu0 %v2568_v20  ;;  %1502 = vmatprep.mubr.f32.mxu0 %v1226_v27  ;;  %v1331_v20 = vld [vmem:[#allocation6 + $0x340] sm:$0xff] }
 0x282   :  { %2571 = vmatprep.subr.bf16.mxu0 %v2570_v23  ;;  %v1336_v23 = vld [vmem:[#allocation6 + $0x368] sm:$0xff]  ;;  %v2608_v26 = vpack.c.bf16 %v1333_v21, %v1331_v20  ;;  %v1624_v20 = vld [vmem:[#allocation12 + $0x18] sm:$0xff] }
 0x283   :  { %v2610_v27 = vpack.c.bf16 %v1338_v24, %v1336_v23  ;;  %v1627_v23 = vld [vmem:[#allocation12 + $0x30] sm:$0xff]  ;;  %v1628_v24 = vld [vmem:[#allocation12 + $0x38] sm:$0xff] }
 0x284   :  { %v1815_v61 = vld [vmem:[#allocation18 + $0x38] sm:$0xff] }
 0x285   :  { %2573 = vmatpush1.bf16.msra.mxu0 %v2572_v30  ;;  %v1340_v30 = vld [vmem:[#allocation6 + $0x388] sm:$0xff] }
 0x286   :  { %2575 = vmatprep.subr.bf16.mxu0 %v2574_v31  ;;  %v1342_v31 = vld [vmem:[#allocation6 + $0x398] sm:$0xff] }
 0x287   :  { %v2614_v33 = vpack.c.bf16 %v1342_v31, %v1340_v30  ;;  %v1631_v30 = vld [vmem:[#allocation12 + $0x50] sm:$0xff]  ;;  %v1632_v31 = vld [vmem:[#allocation12 + $0x58] sm:$0xff] }
 0x289   :  { %2577 = vmatpush1.bf16.msra.mxu0 %v2576_v36  ;;  %v1344_v36 = vld [vmem:[#allocation6 + $0x3a8] sm:$0xff] }
 0x28a   :  { %2579 = vmatprep.subr.bf16.mxu0 %v2578_v37  ;;  %v1346_v37 = vld [vmem:[#allocation6 + $0x3b8] sm:$0xff] }
 0x28b   :  { %v2618_v40 = vpack.c.bf16 %v1346_v37, %v1344_v36  ;;  %v1635_v36 = vld [vmem:[#allocation12 + $0x70] sm:$0xff]  ;;  %v1636_v37 = vld [vmem:[#allocation12 + $0x78] sm:$0xff] }
 0x28d   :  { %2581 = vmatpush1.bf16.msra.mxu0 %v2580_v43  ;;  %v1348_v43 = vld [vmem:[#allocation6 + $0x3c8] sm:$0xff] }
 0x28e   :  { %2583 = vmatprep.subr.bf16.mxu0 %v2582_v44  ;;  %v1350_v44 = vld [vmem:[#allocation6 + $0x3d8] sm:$0xff] }
 0x28f   :  { %v2622_v48 = vpack.c.bf16 %v1350_v44, %v1348_v43  ;;  %v1715_v44 = vld [vmem:[#allocation15] sm:$0xff] }
 0x291   :  { %2585 = vmatpush1.bf16.msra.mxu0 %v2584_v50  ;;  %v1349_v50 = vld [vmem:[#allocation6 + $0x3d0] sm:$0xff] }
 0x292   :  { %2587 = vmatprep.subr.bf16.mxu0 %v2586_v51  ;;  %v1352_v51 = vld [vmem:[#allocation6 + $0x3e8] sm:$0xff]  ;;  %v2624_v53 = vpack.c.bf16 %v1349_v50, %v1347_v49  ;;  %v1717_v50 = vld [vmem:[#allocation15 + $0x10] sm:$0xff] }
 0x293   :  { %v2626_v55 = vpack.c.bf16 %v1354_v52, %v1352_v51  ;;  %v1718_v51 = vld [vmem:[#allocation15 + $0x18] sm:$0xff] }
 0x294   :  { %v2690_v52 = vpack.c.bf16 %v1718_v51, %v1717_v50 }
 0x295   :  { %2589 = vmatpush1.bf16.msra.mxu0 %v2588_v56  ;;  %v1351_v56 = vld [vmem:[#allocation6 + $0x3e0] sm:$0xff] }
 0x296   :  { %2591 = vmatprep.subr.bf16.mxu0 %v2590_v57  ;;  %v1353_v57 = vld [vmem:[#allocation6 + $0x3f0] sm:$0xff] }
 0x297   :  { %v2628_v58 = vpack.c.bf16 %v1353_v57, %v1351_v56  ;;  %v1721_v56 = vld [vmem:[#allocation15 + $0x30] sm:$0xff]  ;;  %v1722_v57 = vld [vmem:[#allocation15 + $0x38] sm:$0xff] }
 0x299   :  { %2593 = vmatpush1.bf16.msra.mxu0 %v2592_v62  ;;  %v1524_v62 = vld [vmem:[#allocation9 + $0x68] sm:$0xff] }
 0x29a   :  { %2595 = vmatprep.subr.bf16.mxu0 %v2594_v63  ;;  %v2656_v63 = vpack.c.bf16 %v1524_v62, %v1523_v60  ;;  %v1725_v62 = vld [vmem:[#allocation15 + $0x50] sm:$0xff] }
 0x29c   :  { %2657 = vmatpush3.bf16.msra.mxu1 %v2656_v63  ;;  %v1726_v63 = vld [vmem:[#allocation15 + $0x58] sm:$0xff] }
 0x29d   :  { %2597 = vmatpush1.bf16.msra.mxu0 %v2596_v5  ;;  %v2660_v5 = vpack.c.bf16 %v1526_v4, %v1525_v2  ;;  %2659 = vmatprep.subr.bf16.mxu1 %v2658_v1  ;;  %v2702_v45 = vpack.c.bf16 %v1726_v63, %v1725_v62  ;;  %v1728_v1 = vld [vmem:[#allocation15 + $0x68] sm:$0xff]  ;;  %v1729_v4 = vld [vmem:[#allocation15 + $0x70] sm:$0xff] }
 0x29e   :  { %2599 = vmatprep.subr.bf16.mxu0 %v2598_v6  ;;  %v3076_v6 = vmov 0.0|0.0   ;;  %v2705_v2 = vpack.c.bf16 %v1728_v1, %v1727_v0 }
 0x2a0   :  { %2661 = vmatpush3.bf16.msra.mxu1 %v2660_v5  ;;  %v1730_v5 = vld [vmem:[#allocation15 + $0x78] sm:$0xff] }
 0x2a1   :  { %2601 = vmatpush1.bf16.msra.mxu0 %v2600_v12  ;;  %2662 = vmatprep.subr.bf16.mxu1 %v3076_v6  ;;  %v2708_v9 = vpack.c.bf16 %v1730_v5, %v1729_v4 }
 0x2a2   :  { %2603 = vmatprep.subr.bf16.mxu0 %v2602_v13  ;;  %v1621_v13 = vld [vmem:[#allocation12] sm:$0xff] }
 0x2a3   :  { %v2663_v17 = vpack.c.bf16 %v1622_v14, %v1621_v13 }
 0x2a5   :  { %2605 = vmatpush1.bf16.msra.mxu0 %v2604_v18 }
 0x2a6   :  { %2607 = vmatprep.subr.bf16.mxu0 %v2606_v19  ;;  %v1623_v19 = vld [vmem:[#allocation12 + $0x10] sm:$0xff] }
 0x2a7   :  { %v2666_v21 = vpack.c.bf16 %v1624_v20, %v1623_v19  ;;  %v1812_v19 = vld [vmem:[#allocation18 + $0x20] sm:$0xff]  ;;  %v1813_v20 = vld [vmem:[#allocation18 + $0x28] sm:$0xff] }
 0x2a9   :  { %2609 = vmatpush1.bf16.msra.mxu0 %v2608_v26  ;;  %v2672_v26 = vpack.c.bf16 %v1628_v24, %v1627_v23  ;;  %v1816_v23 = vld [vmem:[#allocation18 + $0x40] sm:$0xff]  ;;  %v1817_v24 = vld [vmem:[#allocation18 + $0x48] sm:$0xff] }
 0x2aa   :  { %2611 = vmatprep.subr.bf16.mxu0 %v2610_v27  ;;  %v1629_v27 = vld [vmem:[#allocation12 + $0x40] sm:$0xff] }
 0x2ab   :  { %v2675_v29 = vpack.c.bf16 %v1630_v28, %v1629_v27  ;;  %v1819_v27 = vld [vmem:[#allocation18 + $0x58] sm:$0xff] }
 0x2ad   :  { %2613 = vmatpush1.bf16.msra.mxu0 %v2612_v32  ;;  %v2678_v32 = vpack.c.bf16 %v1632_v31, %v1631_v30  ;;  %v1821_v30 = vld [vmem:[#allocation18 + $0x68] sm:$0xff] }
 0x2ae   :  { %2615 = vmatprep.subr.bf16.mxu0 %v2614_v33  ;;  %v1633_v33 = vld [vmem:[#allocation12 + $0x60] sm:$0xff] }
 0x2af   :  { %v2681_v35 = vpack.c.bf16 %v1634_v34, %v1633_v33  ;;  %v1823_v33 = vld [vmem:[#allocation18 + $0x78] sm:$0xff] }
 0x2b1   :  { %2617 = vmatpush1.bf16.msra.mxu0 %v2616_v38  ;;  %v2684_v38 = vpack.c.bf16 %v1636_v37, %v1635_v36 }
 0x2b2   :  { %2619 = vmatprep.subr.bf16.mxu0 %v2618_v40 }
 0x2b5   :  { %2621 = vmatpush1.bf16.msra.mxu0 %v2620_v46  ;;  %v1716_v46 = vld [vmem:[#allocation15 + $0x8] sm:$0xff] }
 0x2b6   :  { %2623 = vmatprep.subr.bf16.mxu0 %v2622_v48  ;;  %v2687_v48 = vpack.c.bf16 %v1716_v46, %v1715_v44 }
 0x2b9   :  { %2625 = vmatpush1.bf16.msra.mxu0 %v2624_v53  ;;  %v1719_v53 = vld [vmem:[#allocation15 + $0x20] sm:$0xff] }
 0x2ba   :  { %2627 = vmatprep.subr.bf16.mxu0 %v2626_v55  ;;  %v2693_v55 = vpack.c.bf16 %v1720_v25, %v1719_v53 }
 0x2bd   :  { %2629 = vmatpush1.bf16.msra.mxu0 %v2628_v58  ;;  %v2696_v58 = vpack.c.bf16 %v1722_v57, %v1721_v56 }
 0x2c0   :  { %1503 = vmatmul.mubr.f32.vlgmr.msra.gmra.mrb[2].mxu0 %v1225_v39  ;;  %v1724_v39 = vld [vmem:[#allocation15 + $0x48] sm:$0xff] }
 0x2c1   :  { %v2699_v60 = vpack.c.bf16 %v1724_v39, %v1723_v59 }
 0x393   :  { %v1504_v8 = vpop.f32.mrb[2].mxu0 }
 0x394   :  { %v2738_v10 = vadd.f32 %v1504_v8, %v1360_v11  ;;  %v1506_v12 = vpop.f32.mrb[3].mxu0  ;;  %v1916_v11 = vld [vmem:[#allocation13] ss:$0 sm:$0xff]  ;;  %v1809_v8 = vld [vmem:[#allocation18 + $0x8] sm:$0xff] }
 0x395   :  { %v2739_v15 = vadd.f32 %v1506_v12, %v1364_v7  ;;  %v1808_v7 = vld [vmem:[#allocation18] sm:$0xff] }
 0x396   :  { %v1509_v18 = vmax.f32 %v2738_v10, 0.0  ;;  %v2711_v14 = vpack.c.bf16 %v1809_v8, %v1808_v7 }
 0x397   :  { %v1510_v16 = vmax.f32 %v2739_v15, 0.0 }
 0x399   :  { %1614 = vmatprep.mubr.f32.mxu1 %v1510_v16  ;;  %v1810_v16 = vld [vmem:[#allocation18 + $0x10] sm:$0xff] }
 0x39a   :  { %1615 = vmatmul.mubr.f32.vlgmr.msra.gmra.mrb[2].mxu1 %v1509_v18 }
 0x39b   :  { %2664 = vmatpush3.bf16.msra.mxu1 %v2663_v17  ;;  %2037 = vmatprep.mubr.msk.f32.mxu1 %vm3077_vm1, %v3075_v54  ;;  %v1811_v17 = vld [vmem:[#allocation18 + $0x18] sm:$0xff] }
 0x39c   :  { %2665 = vmatprep.subr.bf16.mxu1 %v3076_v6  ;;  %v2714_v18 = vpack.c.bf16 %v1811_v17, %v1810_v16 }
 0x39f   :  { %2667 = vmatpush3.bf16.msra.mxu1 %v2666_v21  ;;  %v2717_v21 = vpack.c.bf16 %v1813_v20, %v1812_v19 }
 0x3a0   :  { %2668 = vmatprep.subr.bf16.mxu1 %v3076_v6 }
 0x3a3   :  { %2670 = vmatpush3.bf16.msra.mxu1 %v2669_v3  ;;  %v2720_v3 = vpack.c.bf16 %v1815_v61, %v1814_v22 }
 0x3a4   :  { %2671 = vmatprep.subr.bf16.mxu1 %v3076_v6 }
 0x3a7   :  { %2673 = vmatpush3.bf16.msra.mxu1 %v2672_v26  ;;  %v2723_v26 = vpack.c.bf16 %v1817_v24, %v1816_v23 }
 0x3a8   :  { %2674 = vmatprep.subr.bf16.mxu1 %v3076_v6 }
 0x3ab   :  { %2676 = vmatpush3.bf16.msra.mxu1 %v2675_v29  ;;  %v1820_v29 = vld [vmem:[#allocation18 + $0x60] sm:$0xff] }
 0x3ac   :  { %2677 = vmatprep.subr.bf16.mxu1 %v3076_v6  ;;  %v2729_v31 = vpack.c.bf16 %v1821_v30, %v1820_v29 }
 0x3af   :  { %2679 = vmatpush3.bf16.msra.mxu1 %v2678_v32  ;;  %v1822_v32 = vld [vmem:[#allocation18 + $0x70] sm:$0xff] }
 0x3b0   :  { %2680 = vmatprep.subr.bf16.mxu1 %v3076_v6  ;;  %v2732_v34 = vpack.c.bf16 %v1823_v33, %v1822_v32 }
 0x3b3   :  { %2682 = vmatpush3.bf16.msra.mxu1 %v2681_v35  ;;  %v1917_v35 = vld [vmem:[#allocation16] ss:$0 sm:$0xff] }
 0x3b4   :  { %2683 = vmatprep.subr.bf16.mxu1 %v3076_v6 }
 0x3b7   :  { %2685 = vmatpush3.bf16.msra.mxu1 %v2684_v38 }
 0x3b8   :  { %2686 = vmatprep.subr.bf16.mxu1 %v3076_v6 }
 0x46d   :  { %v1951_v40 = vpop.f32.mrb[2].mxu1 }
 0x46e   :  { %v1952_v42 = vpop.f32.mrb[3].mxu1 }
 0x46f   :  { %v1953_v43 = vadd.f32 %v1952_v42, %v1951_v40  ;;  %v1918_v40 = vld [vmem:[#allocation19] ss:$0 sm:$0xff] }
 0x471   :  { %v1617_v47 = vadd.f32 %v1953_v43, %v1915_v41 }
 0x473   :  { %v1620_v49 = vmax.f32 %v1617_v47, 0.0 }
 0x475   :  { %2038 = vmatmul.mubr.f32.vlgmr.msra.gmra.mrb[4].mxu1 %v1620_v49 }
 0x476   :  { %2688 = vmatpush3.bf16.msra.mxu1 %v2687_v48  ;;  %2072 = vmatprep.mubr.msk.f32.mxu1 %vm3077_vm1, %v3075_v54 }
 0x477   :  { %2689 = vmatprep.subr.bf16.mxu1 %v3076_v6 }
 0x47a   :  { %2691 = vmatpush3.bf16.msra.mxu1 %v2690_v52 }
 0x47b   :  { %2692 = vmatprep.subr.bf16.mxu1 %v3076_v6 }
 0x47e   :  { %2694 = vmatpush3.bf16.msra.mxu1 %v2693_v55 }
 0x47f   :  { %2695 = vmatprep.subr.bf16.mxu1 %v3076_v6 }
 0x482   :  { %2697 = vmatpush3.bf16.msra.mxu1 %v2696_v58 }
 0x483   :  { %2698 = vmatprep.subr.bf16.mxu1 %v3076_v6 }
 0x486   :  { %2700 = vmatpush3.bf16.msra.mxu1 %v2699_v60 }
 0x487   :  { %2701 = vmatprep.subr.bf16.mxu1 %v3076_v6 }
 0x48a   :  { %2703 = vmatpush3.bf16.msra.mxu1 %v2702_v45 }
 0x48b   :  { %2704 = vmatprep.subr.bf16.mxu1 %v3076_v6 }
 0x48e   :  { %2706 = vmatpush3.bf16.msra.mxu1 %v2705_v2 }
 0x48f   :  { %2707 = vmatprep.subr.bf16.mxu1 %v3076_v6 }
 0x492   :  { %2709 = vmatpush3.bf16.msra.mxu1 %v2708_v9 }
 0x493   :  { %2710 = vmatprep.subr.bf16.mxu1 %v3076_v6 }
 0x548   :  { %v1710_v10 = vpop.f32.mrb[4].mxu1 }
 0x549   :  { %v1711_v12 = vadd.f32 %v1916_v11, %v1710_v10  ;;  %v2039_v13 = vpop.f32.mrb[5].mxu1 }
 0x54b   :  { %v1714_v15 = vmax.f32 %v1711_v12, 0.0 }
 0x54d   :  { %2073 = vmatmul.mubr.f32.vlgmr.msra.gmra.mrb[6].mxu1 %v1714_v15 }
 0x54e   :  { %2712 = vmatpush3.bf16.msra.mxu1 %v2711_v14  ;;  %2107 = vmatprep.mubr.msk.f32.mxu1 %vm3077_vm1, %v3075_v54  ;;  %v1818_v54 = vld [vmem:[#allocation18 + $0x50] sm:$0xff] }
 0x54f   :  { %2713 = vmatprep.subr.bf16.mxu1 %v3076_v6  ;;  %v2726_v28 = vpack.c.bf16 %v1819_v27, %v1818_v54 }
 0x552   :  { %2715 = vmatpush3.bf16.msra.mxu1 %v2714_v18 }
 0x553   :  { %2716 = vmatprep.subr.bf16.mxu1 %v3076_v6 }
 0x556   :  { %2718 = vmatpush3.bf16.msra.mxu1 %v2717_v21 }
 0x557   :  { %2719 = vmatprep.subr.bf16.mxu1 %v3076_v6 }
 0x55a   :  { %2721 = vmatpush3.bf16.msra.mxu1 %v2720_v3 }
 0x55b   :  { %2722 = vmatprep.subr.bf16.mxu1 %v3076_v6 }
 0x55e   :  { %2724 = vmatpush3.bf16.msra.mxu1 %v2723_v26 }
 0x55f   :  { %2725 = vmatprep.subr.bf16.mxu1 %v3076_v6 }
 0x562   :  { %2727 = vmatpush3.bf16.msra.mxu1 %v2726_v28 }
 0x563   :  { %2728 = vmatprep.subr.bf16.mxu1 %v3076_v6 }
 0x566   :  { %2730 = vmatpush3.bf16.msra.mxu1 %v2729_v31 }
 0x567   :  { %2731 = vmatprep.subr.bf16.mxu1 %v3076_v6 }
 0x56a   :  { %2733 = vmatpush3.bf16.msra.mxu1 %v2732_v34 }
 0x620   :  { %v1804_v36 = vpop.f32.mrb[6].mxu1 }
 0x621   :  { %v1805_v37 = vadd.f32 %v1917_v35, %v1804_v36  ;;  %v2074_v38 = vpop.f32.mrb[7].mxu1 }
 0x623   :  { %2108 = vmatmul.mubr.f32.vlgmr.msra.gmra.mrb[8].mxu1 %v1805_v37 }
 0x6f6   :  { %v1897_v41 = vpop.f32.mrb[8].mxu1 }
 0x6f7   :  { %v1898_v42 = vadd.f32 %v1918_v40, %v1897_v41  ;;  %v2109_v43 = vpop.f32.mrb[9].mxu1 }
 0x6f9   :  { %1901 = vst [vmem:[%s3430_s13] sm:$0x3] %v1898_v42 }
 0x6fa   :  { %1906 = vsyncpa [#allocation3], 1 }
 0x6fb   :  { %1907 = vsyncpa [#allocation5], 1 }
 0x6fc   :  { %1908 = vsyncpa [#allocation8], 1 }
 0x6fd   :  { %1909 = vsyncpa [#allocation11], 1 }
 0x6fe   :  { %1910 = vsyncpa [#allocation14], 1 }
 0x6ff   :  { %1911 = vsyncpa [#allocation17], 1 }
 0x700   :  { %1912 = vsyncpa [#allocation20], 1 }

</bundles_post_ra>
